<compile_context>
chip_gen: v6e
topology: v6e:2x2x1
jax: 0.10.0
libtpu: 0.0.40
codegen_flags: <defaults>
</compile_context>

<pallas_src>
import functools
import math

import jax
import jax.numpy as jnp
import numpy as np
from jax import lax
from jax.experimental import pallas as pl
from jax.experimental.pallas import tpu as pltpu


def _dif_mha_kernel(
    # sequence inputs
    q_in, k_in, v_in, pos_in, feat_in, mask_in,
    # grouped weights / biases (whole arrays, VMEM resident, fetched once)
    wq, bq, wk, bk, wv, bv,
    wp, bp,            # pos  projection per group: [..., :gd]=query_p, [..., gd:]=key_p
    wf, bf,            # feat projection per group: [..., :gd]=query_f, [..., gd:]=key_f
    wd, bd,            # dense: (n_groups, gd, H) rows + (1, H) bias
    # outputs
    hidden_out, attnmap_out,
    # scratch
    acc_ref,
    *,
    heads_per_group, head_dim, n_groups, compute_dtype,
):
    f32 = jnp.float32
    cdt = compute_dtype
    G, d = heads_per_group, head_dim
    gd = G * d
    g = pl.program_id(1)

    xq = q_in[0]                          # (S, H)
    xk = k_in[0]
    xv = v_in[0]
    xp = pos_in[0]
    xf = feat_in[0]
    mask = mask_in[0, 0].astype(f32)      # (S, S), broadcast over heads

    # --- projections for this head group only (weight slabs selected by a
    #     leading-axis dynamic index; no lane-dim slicing needed) ---
    q_g = jnp.dot(xq, wq[g], preferred_element_type=f32) + bq[g]   # (S, gd)
    k_g = jnp.dot(xk, wk[g], preferred_element_type=f32) + bk[g]   # (S, gd)
    v_g = jnp.dot(xv, wv[g], preferred_element_type=f32) + bv[g]   # (S, gd)
    p_g = jnp.dot(xp, wp[g], preferred_element_type=f32) + bp[g]   # (S, 2gd): [qp_g | kp_g]
    f_g = jnp.dot(xf, wf[g], preferred_element_type=f32) + bf[g]   # (S, 2gd): [qf_g | kf_g]
    wd_g = wd[g]                                                   # (gd, H)

    @pl.when(g == 0)
    def _init():
        acc_ref[...] = jnp.zeros_like(acc_ref)

    inv_sqrt_d = 1.0 / math.sqrt(d)
    dn_nt = (((1,), (1,)), ((), ()))      # contract last dims of both operands (no transpose)

    # Static, tiny loop (default G == 1 -> single iteration, no slicing at all).
    for i in range(G):
        sq = slice(i * d, (i + 1) * d)             # query-side cols inside the group
        sk = slice(gd + i * d, gd + (i + 1) * d)   # key-side cols in the fused pos/feat outputs

        qh = q_g[:, sq].astype(cdt)
        kh = k_g[:, sq].astype(cdt)
        # Raw q.k^T map -- this exact tensor is the module's second output.
        attn_map = lax.dot_general(qh, kh, dn_nt, preferred_element_type=f32)      # (S, S)

        pos_map = lax.dot_general(p_g[:, sq].astype(cdt), p_g[:, sk].astype(cdt),
                                  dn_nt, preferred_element_type=f32)
        feat_map = lax.dot_general(f_g[:, sq].astype(cdt), f_g[:, sk].astype(cdt),
                                   dn_nt, preferred_element_type=f32)

        # Query-side pos/feat weights were pre-scaled by 1/sqrt(d) on the host.
        scores = attn_map * inv_sqrt_d + pos_map + feat_map + mask
        scores = scores - jnp.max(scores, axis=-1, keepdims=True)
        e = jnp.exp(scores)
        probs = e * pl.reciprocal(jnp.sum(e, axis=-1, keepdims=True), approx=False)
        # TODO(synk): attn_dropout / out_dropout omitted (eval-mode identity).

        ctx = jnp.dot(probs.astype(cdt), v_g[:, sq].astype(cdt),
                      preferred_element_type=f32)                                   # (S, d)

        attnmap_out[0, i] = attn_map.astype(attnmap_out.dtype)
        # Accumulate this head's dense contribution directly (lane-dense store):
        #   hidden += ctx_h @ Wd^T[rows of head h]
        acc_ref[...] += jnp.dot(ctx.astype(cdt), wd_g[sq, :].astype(cdt),
                                preferred_element_type=f32)

    @pl.when(g == n_groups - 1)
    def _finalize():
        hidden_out[0] = (acc_ref[...] + bd[...]).astype(hidden_out.dtype)


def dif_multi_head_attention(
    query_states, key_states, value_states, attention_mask,
    position_embedding, feat_embedding, params, *,
    n_heads, heads_per_group=1,
):
    """params: dict of (out,in) PyTorch-style weights + (out,) biases."""
    B, S, H = query_states.shape
    if H % n_heads != 0:
        raise ValueError("hidden_size must be a multiple of n_heads")
    head_dim = H // n_heads
    if n_heads % heads_per_group != 0:
        raise ValueError("n_heads must be a multiple of heads_per_group")
    n_groups = n_heads // heads_per_group
    gd = heads_per_group * head_dim

    in_dtype = query_states.dtype
    f32 = jnp.float32
    # bf16/f16 inputs -> bf16/f16 MXU operands (f32 accumulation kept);
    # f32 inputs -> exact f32 path.
    compute_dtype = (
        in_dtype if in_dtype in (jnp.dtype(jnp.bfloat16), jnp.dtype(jnp.float16)) else f32
    )
    inv_sqrt_d = 1.0 / math.sqrt(head_dim)

    def wt(name, scale=None):   # nn.Linear stores W as (out, in); kernel does x @ W.T
        w = jnp.asarray(params[name + "_w"]).astype(f32).T          # (H_in, H_out)
        if scale is not None:
            w = w * scale
        return w.astype(in_dtype)

    def bias(name, scale=None):  # biases stay f32 (added to f32 accumulators)
        b = jnp.asarray(params[name + "_b"]).astype(f32).reshape(1, -1)
        return b * scale if scale is not None else b

    def gw(name, scale=None):    # grouped projection weight: (n_groups, H, gd)
        return wt(name, scale).reshape(H, n_groups, gd).transpose(1, 0, 2)

    def gb(name, scale=None):    # grouped projection bias: (n_groups, 1, gd)
        return bias(name, scale).reshape(n_groups, 1, gd)

    wq_, wk_, wv_ = gw("query"), gw("key"), gw("value")
    bq_, bk_, bv_ = gb("query"), gb("key"), gb("value")
    # pos/feat: fuse query/key projections per group; pre-scale query side by 1/sqrt(d).
    wp_ = jnp.concatenate([gw("query_p", inv_sqrt_d), gw("key_p")], axis=2)   # (n_groups, H, 2gd)
    bp_ = jnp.concatenate([gb("query_p", inv_sqrt_d), gb("key_p")], axis=2)   # (n_groups, 1, 2gd)
    wf_ = jnp.concatenate([gw("query_f", inv_sqrt_d), gw("key_f")], axis=2)
    bf_ = jnp.concatenate([gb("query_f", inv_sqrt_d), gb("key_f")], axis=2)
    wd_ = wt("dense").reshape(n_groups, gd, H)                                # (n_groups, gd, H)
    bd_ = bias("dense")                                                       # (1, H)

    weight_args = [wq_, bq_, wk_, bk_, wv_, bv_, wp_, bp_, wf_, bf_, wd_, bd_]

    # VMEM budget: ~75% of the physical per-core VMEM, capped at 100 MiB
    # (v7x only has 64 MiB physical; v5e's 16 MiB scoped default is too small).
    try:
        info = pltpu.get_tpu_info()
        phys = int(getattr(info, "vmem_capacity_bytes", 128 * 1024 * 1024))
    except Exception:
        phys = 64 * 1024 * 1024
    vmem_limit = int(min(phys * 3 // 4, 100 * 1024 * 1024))

    out_shape = (
        jax.ShapeDtypeStruct((B, S, H), in_dtype),
        jax.ShapeDtypeStruct((B, n_heads, S, S), in_dtype),
    )

    kernel = functools.partial(
        _dif_mha_kernel,
        heads_per_group=heads_per_group, head_dim=head_dim,
        n_groups=n_groups, compute_dtype=compute_dtype,
    )

    def build_call(single_buffer_weights):
        def const_spec(arr):
            # Constant index map: the block never changes across the grid, so the
            # weight is DMA'd from HBM exactly once.
            idx = lambda b, g, _n=arr.ndim: (0,) * _n
            if single_buffer_weights and hasattr(pl, "Buffered"):
                # Single-buffer the constant blocks (default double-buffering
                # wastes VMEM on arrays that never change).
                return pl.BlockSpec(arr.shape, idx, pipeline_mode=pl.Buffered(1))
            return pl.BlockSpec(arr.shape, idx)

        seq_spec = pl.BlockSpec((1, S, H), lambda b, g: (b, 0, 0))
        # Mask may differ per batch element, so it is indexed by b (re-fetched
        # once per b only; constant across the head-group axis).
        mask_spec = pl.BlockSpec((1, 1, S, S), lambda b, g: (b, 0, 0, 0))
        in_specs = [seq_spec] * 5 + [mask_spec] + [const_spec(a) for a in weight_args]
        out_specs = (
            pl.BlockSpec((1, S, H), lambda b, g: (b, 0, 0)),                      # accumulated over g
            pl.BlockSpec((1, heads_per_group, S, S), lambda b, g: (b, g, 0, 0)),  # per head group
        )
        return pl.pallas_call(
            kernel,
            out_shape=out_shape,
            grid_spec=pltpu.PrefetchScalarGridSpec(
                num_scalar_prefetch=0,
                grid=(B, n_groups),
                in_specs=in_specs,
                out_specs=out_specs,
                scratch_shapes=[pltpu.VMEM((S, H), f32)],   # hidden accumulator
            ),
            compiler_params=pltpu.CompilerParams(
                # TODO(synk): a query-tile parallel axis would additionally feed
                # v7x's second TensorCore when B is small.
                dimension_semantics=("parallel", "arbitrary"),
                vmem_limit_bytes=vmem_limit,
            ),
        )

    args = (query_states, key_states, value_states,
            position_embedding, feat_embedding, attention_mask, *weight_args)
    try:
        return build_call(True)(*args)
    except Exception:
        # pipeline_mode=pl.Buffered(1) unsupported on this JAX/Mosaic version:
        # fall back to default-buffered constant weight blocks.
        return build_call(False)(*args)


def _reference(query_states, key_states, value_states, attention_mask,
               position_embedding, feat_embedding, params, *, n_heads):
    """Pure-JAX reference mirroring the PyTorch forward (eval mode)."""
    B, S, H = query_states.shape
    d = H // n_heads

    def lin(x, name):
        return x @ jnp.asarray(params[name + "_w"]).T + jnp.asarray(params[name + "_b"])

    def split(x):  # (B,S,H) -> (B, nh, S, d)
        return x.reshape(B, S, n_heads, d).transpose(0, 2, 1, 3)

    q = split(lin(query_states, "query"))
    k = split(lin(key_states, "key"))
    v = split(lin(value_states, "value"))
    qp = split(lin(position_embedding, "query_p"))
    kp = split(lin(position_embedding, "key_p"))
    qf = split(lin(feat_embedding, "query_f"))
    kf = split(lin(feat_embedding, "key_f"))

    attn_map = jnp.einsum("bhqd,bhkd->bhqk", q, k)
    pos_map = jnp.einsum("bhqd,bhkd->bhqk", qp, kp)
    feat_map = jnp.einsum("bhqd,bhkd->bhqk", qf, kf)
    scores = (attn_map + pos_map + feat_map) / math.sqrt(d) + attention_mask
    probs = jax.nn.softmax(scores, axis=-1)
    ctx = jnp.einsum("bhqk,bhkd->bhqd", probs, v).transpose(0, 2, 1, 3).reshape(B, S, H)
    hidden = ctx @ jnp.asarray(params["dense_w"]).T + jnp.asarray(params["dense_b"])
    return hidden, attn_map


if __name__ == "__main__":
    B, S, H, n_heads = 2, 8, 32, 2

    key = jax.random.PRNGKey(0)
    keys = jax.random.split(key, 32)
    ki = iter(keys)

    # Deterministic parameter init (PyTorch-nn.Linear-like uniform bounds).
    bound = 1.0 / math.sqrt(H)
    params = {}
    for name in ("query", "key", "value", "query_p", "key_p", "query_f", "key_f", "dense"):
        params[name + "_w"] = jax.random.uniform(next(ki), (H, H), jnp.float32, -bound, bound)
        params[name + "_b"] = jax.random.uniform(next(ki), (H,), jnp.float32, -bound, bound)

    q_states = jax.random.normal(next(ki), (B, S, H), jnp.float32)
    k_states = jax.random.normal(next(ki), (B, S, H), jnp.float32)
    v_states = jax.random.normal(next(ki), (B, S, H), jnp.float32)
    pos_emb = jax.random.normal(next(ki), (B, S, H), jnp.float32)
    feat_emb = jax.random.normal(next(ki), (B, S, H), jnp.float32)
    # Causal-style additive attention mask, (B, 1, S, S).
    causal = jnp.tril(jnp.ones((S, S), jnp.float32))
    attn_mask = jnp.broadcast_to((1.0 - causal) * -10000.0, (B, 1, S, S))

    hidden, attn_map = dif_multi_head_attention(
        q_states, k_states, v_states, attn_mask, pos_emb, feat_emb,
        params, n_heads=n_heads,
    )
    hidden = jax.block_until_ready(hidden)
    attn_map = jax.block_until_ready(attn_map)

    ref_hidden, ref_attn = _reference(
        q_states, k_states, v_states, attn_mask, pos_emb, feat_emb,
        params, n_heads=n_heads,
    )
    np.testing.assert_allclose(np.asarray(hidden), np.asarray(ref_hidden), rtol=1e-4, atol=1e-4)
    np.testing.assert_allclose(np.asarray(attn_map), np.asarray(ref_attn), rtol=1e-4, atol=1e-4)

    print("KERNEL_OK")
</pallas_src>

<mosaic_0001>
module attributes {stable_mosaic.version = 11 : i64} {
  func.func @_dif_mha_kernel(%arg0: i32, %arg1: i32, %arg2: memref<1x8x32xf32, #tpu.memory_space<vmem>>, %arg3: memref<1x8x32xf32, #tpu.memory_space<vmem>>, %arg4: memref<1x8x32xf32, #tpu.memory_space<vmem>>, %arg5: memref<1x8x32xf32, #tpu.memory_space<vmem>>, %arg6: memref<1x8x32xf32, #tpu.memory_space<vmem>>, %arg7: memref<1x1x8x8xf32, #tpu.memory_space<vmem>>, %arg8: memref<2x32x16xf32, #tpu.memory_space<vmem>>, %arg9: memref<2x1x16xf32, #tpu.memory_space<vmem>>, %arg10: memref<2x32x16xf32, #tpu.memory_space<vmem>>, %arg11: memref<2x1x16xf32, #tpu.memory_space<vmem>>, %arg12: memref<2x32x16xf32, #tpu.memory_space<vmem>>, %arg13: memref<2x1x16xf32, #tpu.memory_space<vmem>>, %arg14: memref<2x32x32xf32, #tpu.memory_space<vmem>>, %arg15: memref<2x1x32xf32, #tpu.memory_space<vmem>>, %arg16: memref<2x32x32xf32, #tpu.memory_space<vmem>>, %arg17: memref<2x1x32xf32, #tpu.memory_space<vmem>>, %arg18: memref<2x16x32xf32, #tpu.memory_space<vmem>>, %arg19: memref<1x32xf32, #tpu.memory_space<vmem>>, %arg20: memref<1x8x32xf32, #tpu.memory_space<vmem>>, %arg21: memref<1x1x8x8xf32, #tpu.memory_space<vmem>>, %arg22: memref<8x32xf32, #tpu.memory_space<vmem>>) attributes {dimension_semantics = [#tpu.dimension_semantics<parallel>, #tpu.dimension_semantics<arbitrary>], iteration_bounds = array<i64: 2, 2>, scalar_prefetch = 0 : i64, scratch_operands = 1 : i64, tpu.core_type = #tpu.core_type<tc>, window_params = [{transform_indices = @transform_0, window_bounds = array<i64: 1, 8, 32>}, {transform_indices = @transform_1, window_bounds = array<i64: 1, 8, 32>}, {transform_indices = @transform_2, window_bounds = array<i64: 1, 8, 32>}, {transform_indices = @transform_3, window_bounds = array<i64: 1, 8, 32>}, {transform_indices = @transform_4, window_bounds = array<i64: 1, 8, 32>}, {transform_indices = @transform_5, window_bounds = array<i64: 1, 1, 8, 8>}, {pipeline_mode = #tpu.pipeline_mode<synchronous>, transform_indices = @transform_6, window_bounds = array<i64: 2, 32, 16>}, {pipeline_mode = #tpu.pipeline_mode<synchronous>, transform_indices = @transform_7, window_bounds = array<i64: 2, 1, 16>}, {pipeline_mode = #tpu.pipeline_mode<synchronous>, transform_indices = @transform_8, window_bounds = array<i64: 2, 32, 16>}, {pipeline_mode = #tpu.pipeline_mode<synchronous>, transform_indices = @transform_9, window_bounds = array<i64: 2, 1, 16>}, {pipeline_mode = #tpu.pipeline_mode<synchronous>, transform_indices = @transform_10, window_bounds = array<i64: 2, 32, 16>}, {pipeline_mode = #tpu.pipeline_mode<synchronous>, transform_indices = @transform_11, window_bounds = array<i64: 2, 1, 16>}, {pipeline_mode = #tpu.pipeline_mode<synchronous>, transform_indices = @transform_12, window_bounds = array<i64: 2, 32, 32>}, {pipeline_mode = #tpu.pipeline_mode<synchronous>, transform_indices = @transform_13, window_bounds = array<i64: 2, 1, 32>}, {pipeline_mode = #tpu.pipeline_mode<synchronous>, transform_indices = @transform_14, window_bounds = array<i64: 2, 32, 32>}, {pipeline_mode = #tpu.pipeline_mode<synchronous>, transform_indices = @transform_15, window_bounds = array<i64: 2, 1, 32>}, {pipeline_mode = #tpu.pipeline_mode<synchronous>, transform_indices = @transform_16, window_bounds = array<i64: 2, 16, 32>}, {pipeline_mode = #tpu.pipeline_mode<synchronous>, transform_indices = @transform_17, window_bounds = array<i64: 1, 32>}, {transform_indices = @transform_18, window_bounds = array<i64: 1, 8, 32>}, {transform_indices = @transform_19, window_bounds = array<i64: 1, 1, 8, 8>}]} {
    %c0 = arith.constant 0 : index
    %c0_0 = arith.constant 0 : index
    %c0_1 = arith.constant 0 : index
    %0 = vector.load %arg2[%c0, %c0_0, %c0_1] : memref<1x8x32xf32, #tpu.memory_space<vmem>>, vector<1x8x32xf32>
    %1 = vector.shape_cast %0 : vector<1x8x32xf32> to vector<8x32xf32>
    %c0_2 = arith.constant 0 : index
    %c0_3 = arith.constant 0 : index
    %c0_4 = arith.constant 0 : index
    %2 = vector.load %arg3[%c0_2, %c0_3, %c0_4] : memref<1x8x32xf32, #tpu.memory_space<vmem>>, vector<1x8x32xf32>
    %3 = vector.shape_cast %2 : vector<1x8x32xf32> to vector<8x32xf32>
    %c0_5 = arith.constant 0 : index
    %c0_6 = arith.constant 0 : index
    %c0_7 = arith.constant 0 : index
    %4 = vector.load %arg4[%c0_5, %c0_6, %c0_7] : memref<1x8x32xf32, #tpu.memory_space<vmem>>, vector<1x8x32xf32>
    %5 = vector.shape_cast %4 : vector<1x8x32xf32> to vector<8x32xf32>
    %c0_8 = arith.constant 0 : index
    %c0_9 = arith.constant 0 : index
    %c0_10 = arith.constant 0 : index
    %6 = vector.load %arg5[%c0_8, %c0_9, %c0_10] : memref<1x8x32xf32, #tpu.memory_space<vmem>>, vector<1x8x32xf32>
    %7 = vector.shape_cast %6 : vector<1x8x32xf32> to vector<8x32xf32>
    %c0_11 = arith.constant 0 : index
    %c0_12 = arith.constant 0 : index
    %c0_13 = arith.constant 0 : index
    %8 = vector.load %arg6[%c0_11, %c0_12, %c0_13] : memref<1x8x32xf32, #tpu.memory_space<vmem>>, vector<1x8x32xf32>
    %9 = vector.shape_cast %8 : vector<1x8x32xf32> to vector<8x32xf32>
    %c0_14 = arith.constant 0 : index
    %c0_15 = arith.constant 0 : index
    %c0_16 = arith.constant 0 : index
    %c0_17 = arith.constant 0 : index
    %10 = vector.load %arg7[%c0_14, %c0_15, %c0_16, %c0_17] : memref<1x1x8x8xf32, #tpu.memory_space<vmem>>, vector<1x1x8x8xf32>
    %11 = vector.shape_cast %10 : vector<1x1x8x8xf32> to vector<8x8xf32>
    %12 = arith.index_cast %arg1 : i32 to index
    %c0_18 = arith.constant 0 : index
    %c0_19 = arith.constant 0 : index
    %13 = vector.load %arg8[%12, %c0_18, %c0_19] : memref<2x32x16xf32, #tpu.memory_space<vmem>>, vector<1x32x16xf32>
    %14 = vector.shape_cast %13 : vector<1x32x16xf32> to vector<32x16xf32>
    %cst = arith.constant dense<0.000000e+00> : vector<8x16xf32>
    %15 = tpu.matmul %1, %14, %cst {dimension_numbers = #tpu.dot_dimension_numbers<[1], [0], [0], [1], [0, 0, 1, 1], [], []>} : vector<8x32xf32>, vector<32x16xf32>, vector<8x16xf32> -> vector<8x16xf32>
    %16 = arith.index_cast %arg1 : i32 to index
    %c0_20 = arith.constant 0 : index
    %c0_21 = arith.constant 0 : index
    %17 = vector.load %arg9[%16, %c0_20, %c0_21] : memref<2x1x16xf32, #tpu.memory_space<vmem>>, vector<1x1x16xf32>
    %18 = vector.shape_cast %17 : vector<1x1x16xf32> to vector<1x16xf32>
    %19 = vector.broadcast %18 : vector<1x16xf32> to vector<8x16xf32>
    %20 = arith.addf %15, %19 : vector<8x16xf32>
    %21 = arith.index_cast %arg1 : i32 to index
    %c0_22 = arith.constant 0 : index
    %c0_23 = arith.constant 0 : index
    %22 = vector.load %arg10[%21, %c0_22, %c0_23] : memref<2x32x16xf32, #tpu.memory_space<vmem>>, vector<1x32x16xf32>
    %23 = vector.shape_cast %22 : vector<1x32x16xf32> to vector<32x16xf32>
    %cst_24 = arith.constant dense<0.000000e+00> : vector<8x16xf32>
    %24 = tpu.matmul %3, %23, %cst_24 {dimension_numbers = #tpu.dot_dimension_numbers<[1], [0], [0], [1], [0, 0, 1, 1], [], []>} : vector<8x32xf32>, vector<32x16xf32>, vector<8x16xf32> -> vector<8x16xf32>
    %25 = arith.index_cast %arg1 : i32 to index
    %c0_25 = arith.constant 0 : index
    %c0_26 = arith.constant 0 : index
    %26 = vector.load %arg11[%25, %c0_25, %c0_26] : memref<2x1x16xf32, #tpu.memory_space<vmem>>, vector<1x1x16xf32>
    %27 = vector.shape_cast %26 : vector<1x1x16xf32> to vector<1x16xf32>
    %28 = vector.broadcast %27 : vector<1x16xf32> to vector<8x16xf32>
    %29 = arith.addf %24, %28 : vector<8x16xf32>
    %30 = arith.index_cast %arg1 : i32 to index
    %c0_27 = arith.constant 0 : index
    %c0_28 = arith.constant 0 : index
    %31 = vector.load %arg12[%30, %c0_27, %c0_28] : memref<2x32x16xf32, #tpu.memory_space<vmem>>, vector<1x32x16xf32>
    %32 = vector.shape_cast %31 : vector<1x32x16xf32> to vector<32x16xf32>
    %cst_29 = arith.constant dense<0.000000e+00> : vector<8x16xf32>
    %33 = tpu.matmul %5, %32, %cst_29 {dimension_numbers = #tpu.dot_dimension_numbers<[1], [0], [0], [1], [0, 0, 1, 1], [], []>} : vector<8x32xf32>, vector<32x16xf32>, vector<8x16xf32> -> vector<8x16xf32>
    %34 = arith.index_cast %arg1 : i32 to index
    %c0_30 = arith.constant 0 : index
    %c0_31 = arith.constant 0 : index
    %35 = vector.load %arg13[%34, %c0_30, %c0_31] : memref<2x1x16xf32, #tpu.memory_space<vmem>>, vector<1x1x16xf32>
    %36 = vector.shape_cast %35 : vector<1x1x16xf32> to vector<1x16xf32>
    %37 = vector.broadcast %36 : vector<1x16xf32> to vector<8x16xf32>
    %38 = arith.addf %33, %37 : vector<8x16xf32>
    %39 = arith.index_cast %arg1 : i32 to index
    %c0_32 = arith.constant 0 : index
    %c0_33 = arith.constant 0 : index
    %40 = vector.load %arg14[%39, %c0_32, %c0_33] : memref<2x32x32xf32, #tpu.memory_space<vmem>>, vector<1x32x32xf32>
    %41 = vector.shape_cast %40 : vector<1x32x32xf32> to vector<32x32xf32>
    %cst_34 = arith.constant dense<0.000000e+00> : vector<8x32xf32>
    %42 = tpu.matmul %7, %41, %cst_34 {dimension_numbers = #tpu.dot_dimension_numbers<[1], [0], [0], [1], [0, 0, 1, 1], [], []>} : vector<8x32xf32>, vector<32x32xf32>, vector<8x32xf32> -> vector<8x32xf32>
    %43 = arith.index_cast %arg1 : i32 to index
    %c0_35 = arith.constant 0 : index
    %c0_36 = arith.constant 0 : index
    %44 = vector.load %arg15[%43, %c0_35, %c0_36] : memref<2x1x32xf32, #tpu.memory_space<vmem>>, vector<1x1x32xf32>
    %45 = vector.shape_cast %44 : vector<1x1x32xf32> to vector<1x32xf32>
    %46 = vector.broadcast %45 : vector<1x32xf32> to vector<8x32xf32>
    %47 = arith.addf %42, %46 : vector<8x32xf32>
    %48 = arith.index_cast %arg1 : i32 to index
    %c0_37 = arith.constant 0 : index
    %c0_38 = arith.constant 0 : index
    %49 = vector.load %arg16[%48, %c0_37, %c0_38] : memref<2x32x32xf32, #tpu.memory_space<vmem>>, vector<1x32x32xf32>
    %50 = vector.shape_cast %49 : vector<1x32x32xf32> to vector<32x32xf32>
    %cst_39 = arith.constant dense<0.000000e+00> : vector<8x32xf32>
    %51 = tpu.matmul %9, %50, %cst_39 {dimension_numbers = #tpu.dot_dimension_numbers<[1], [0], [0], [1], [0, 0, 1, 1], [], []>} : vector<8x32xf32>, vector<32x32xf32>, vector<8x32xf32> -> vector<8x32xf32>
    %52 = arith.index_cast %arg1 : i32 to index
    %c0_40 = arith.constant 0 : index
    %c0_41 = arith.constant 0 : index
    %53 = vector.load %arg17[%52, %c0_40, %c0_41] : memref<2x1x32xf32, #tpu.memory_space<vmem>>, vector<1x1x32xf32>
    %54 = vector.shape_cast %53 : vector<1x1x32xf32> to vector<1x32xf32>
    %55 = vector.broadcast %54 : vector<1x32xf32> to vector<8x32xf32>
    %56 = arith.addf %51, %55 : vector<8x32xf32>
    %57 = arith.index_cast %arg1 : i32 to index
    %c0_42 = arith.constant 0 : index
    %c0_43 = arith.constant 0 : index
    %58 = vector.load %arg18[%57, %c0_42, %c0_43] : memref<2x16x32xf32, #tpu.memory_space<vmem>>, vector<1x16x32xf32>
    %59 = vector.shape_cast %58 : vector<1x16x32xf32> to vector<16x32xf32>
    %c0_i32 = arith.constant 0 : i32
    %60 = arith.cmpi eq, %arg1, %c0_i32 : i32
    %61 = arith.extui %60 : i1 to i32
    %c0_i32_44 = arith.constant 0 : i32
    %62 = arith.cmpi ne, %61, %c0_i32_44 : i32
    scf.if %62 {
      %cst_62 = arith.constant 0.000000e+00 : f32
      %96 = vector.broadcast %cst_62 : f32 to vector<8x32xf32>
      %c0_63 = arith.constant 0 : index
      %c0_64 = arith.constant 0 : index
      %97 = vector.load %arg22[%c0_63, %c0_64] : memref<8x32xf32, #tpu.memory_space<vmem>>, vector<8x32xf32>
      tpu.vector_store %arg22[%c0_63, %c0_64], %96 {strides = array<i32>} : memref<8x32xf32, #tpu.memory_space<vmem>>, vector<8x32xf32>,
    } else {
    }
    %cst_45 = arith.constant dense<0.000000e+00> : vector<8x8xf32>
    %63 = tpu.matmul %20, %29, %cst_45 {dimension_numbers = #tpu.dot_dimension_numbers<[1], [1], [0], [0], [0, 0, 1, 0], [], []>} : vector<8x16xf32>, vector<8x16xf32>, vector<8x8xf32> -> vector<8x8xf32>
    %64 = vector.extract_strided_slice %47 {offsets = [0, 0], sizes = [8, 16], strides = [1, 1]} : vector<8x32xf32> to vector<8x16xf32>
    %65 = vector.extract_strided_slice %47 {offsets = [0, 16], sizes = [8, 16], strides = [1, 1]} : vector<8x32xf32> to vector<8x16xf32>
    %cst_46 = arith.constant dense<0.000000e+00> : vector<8x8xf32>
    %66 = tpu.matmul %64, %65, %cst_46 {dimension_numbers = #tpu.dot_dimension_numbers<[1], [1], [0], [0], [0, 0, 1, 0], [], []>} : vector<8x16xf32>, vector<8x16xf32>, vector<8x8xf32> -> vector<8x8xf32>
    %67 = vector.extract_strided_slice %56 {offsets = [0, 0], sizes = [8, 16], strides = [1, 1]} : vector<8x32xf32> to vector<8x16xf32>
    %68 = vector.extract_strided_slice %56 {offsets = [0, 16], sizes = [8, 16], strides = [1, 1]} : vector<8x32xf32> to vector<8x16xf32>
    %cst_47 = arith.constant dense<0.000000e+00> : vector<8x8xf32>
    %69 = tpu.matmul %67, %68, %cst_47 {dimension_numbers = #tpu.dot_dimension_numbers<[1], [1], [0], [0], [0, 0, 1, 0], [], []>} : vector<8x16xf32>, vector<8x16xf32>, vector<8x8xf32> -> vector<8x8xf32>
    %cst_48 = arith.constant 2.500000e-01 : f32
    %70 = vector.broadcast %cst_48 : f32 to vector<8x8xf32>
    %71 = arith.mulf %63, %70 : vector<8x8xf32>
    %72 = arith.addf %71, %66 : vector<8x8xf32>
    %73 = arith.addf %72, %69 : vector<8x8xf32>
    %74 = arith.addf %73, %11 : vector<8x8xf32>
    %cst_49 = arith.constant dense<0xFF800000> : vector<8xf32>
    %75 = vector.multi_reduction <maximumf>, %74, %cst_49 [1] : vector<8x8xf32> to vector<8xf32>
    %76 = vector.shape_cast %75 : vector<8xf32> to vector<8x1xf32>
    %77 = vector.broadcast %76 : vector<8x1xf32> to vector<8x8xf32>
    %78 = arith.subf %74, %77 : vector<8x8xf32>
    %79 = math.exp %78 : vector<8x8xf32>
    %cst_50 = arith.constant dense<0.000000e+00> : vector<8xf32>
    %80 = vector.multi_reduction <add>, %79, %cst_50 [1] : vector<8x8xf32> to vector<8xf32>
    %81 = vector.shape_cast %80 : vector<8xf32> to vector<8x1xf32>
    %82 = tpu.reciprocal %81 : vector<8x1xf32> -> vector<8x1xf32>
    %83 = vector.broadcast %82 : vector<8x1xf32> to vector<8x8xf32>
    %84 = arith.mulf %79, %83 : vector<8x8xf32>
    %cst_51 = arith.constant dense<0.000000e+00> : vector<8x16xf32>
    %85 = tpu.matmul %84, %38, %cst_51 {dimension_numbers = #tpu.dot_dimension_numbers<[1], [0], [0], [1], [0, 0, 1, 1], [], []>} : vector<8x8xf32>, vector<8x16xf32>, vector<8x16xf32> -> vector<8x16xf32>
    %c0_52 = arith.constant 0 : index
    %c0_53 = arith.constant 0 : index
    %c0_54 = arith.constant 0 : index
    %c0_55 = arith.constant 0 : index
    %86 = vector.load %arg21[%c0_52, %c0_53, %c0_54, %c0_55] : memref<1x1x8x8xf32, #tpu.memory_space<vmem>>, vector<1x1x8x8xf32>
    %87 = vector.shape_cast %86 : vector<1x1x8x8xf32> to vector<8x8xf32>
    %88 = vector.shape_cast %63 : vector<8x8xf32> to vector<1x1x8x8xf32>
    tpu.vector_store %arg21[%c0_52, %c0_53, %c0_54, %c0_55], %88 {strides = array<i32>} : memref<1x1x8x8xf32, #tpu.memory_space<vmem>>, vector<1x1x8x8xf32>,
    %c0_56 = arith.constant 0 : index
    %c0_57 = arith.constant 0 : index
    %89 = vector.load %arg22[%c0_56, %c0_57] : memref<8x32xf32, #tpu.memory_space<vmem>>, vector<8x32xf32>
    %cst_58 = arith.constant dense<0.000000e+00> : vector<8x32xf32>
    %90 = tpu.matmul %85, %59, %cst_58 {dimension_numbers = #tpu.dot_dimension_numbers<[1], [0], [0], [1], [0, 0, 1, 1], [], []>} : vector<8x16xf32>, vector<16x32xf32>, vector<8x32xf32> -> vector<8x32xf32>
    %91 = arith.addf %89, %90 : vector<8x32xf32>
    %c0_59 = arith.constant 0 : index
    %c0_60 = arith.constant 0 : index
    %92 = vector.load %arg22[%c0_59, %c0_60] : memref<8x32xf32, #tpu.memory_space<vmem>>, vector<8x32xf32>
    tpu.vector_store %arg22[%c0_59, %c0_60], %91 {strides = array<i32>} : memref<8x32xf32, #tpu.memory_space<vmem>>, vector<8x32xf32>,
    %c1_i32 = arith.constant 1 : i32
    %93 = arith.cmpi eq, %arg1, %c1_i32 : i32
    %94 = arith.extui %93 : i1 to i32
    %c0_i32_61 = arith.constant 0 : i32
    %95 = arith.cmpi ne, %94, %c0_i32_61 : i32
    scf.if %95 {
      %c0_62 = arith.constant 0 : index
      %c0_63 = arith.constant 0 : index
      %96 = vector.load %arg22[%c0_62, %c0_63] : memref<8x32xf32, #tpu.memory_space<vmem>>, vector<8x32xf32>
      %c0_64 = arith.constant 0 : index
      %c0_65 = arith.constant 0 : index
      %97 = vector.load %arg19[%c0_64, %c0_65] : memref<1x32xf32, #tpu.memory_space<vmem>>, vector<1x32xf32>
      %98 = vector.broadcast %97 : vector<1x32xf32> to vector<8x32xf32>
      %99 = arith.addf %96, %98 : vector<8x32xf32>
      %c0_66 = arith.constant 0 : index
      %c0_67 = arith.constant 0 : index
      %c0_68 = arith.constant 0 : index
      %100 = vector.load %arg20[%c0_66, %c0_67, %c0_68] : memref<1x8x32xf32, #tpu.memory_space<vmem>>, vector<1x8x32xf32>
      %101 = vector.shape_cast %100 : vector<1x8x32xf32> to vector<8x32xf32>
      %102 = vector.shape_cast %99 : vector<8x32xf32> to vector<1x8x32xf32>
      tpu.vector_store %arg20[%c0_66, %c0_67, %c0_68], %102 {strides = array<i32>} : memref<1x8x32xf32, #tpu.memory_space<vmem>>, vector<1x8x32xf32>,
    } else {
    }
    return
  }
  func.func @transform_0(%arg0: i32, %arg1: i32) -> (i32, i32, i32) {
    %c0_i32 = arith.constant 0 : i32
    %c0_i32_0 = arith.constant 0 : i32
    %c0_i32_1 = arith.constant 0 : i32
    return %arg0, %c0_i32, %c0_i32_0 : i32, i32, i32
  }
  func.func @transform_1(%arg0: i32, %arg1: i32) -> (i32, i32, i32) {
    %c0_i32 = arith.constant 0 : i32
    %c0_i32_0 = arith.constant 0 : i32
    %c0_i32_1 = arith.constant 0 : i32
    return %arg0, %c0_i32, %c0_i32_0 : i32, i32, i32
  }
  func.func @transform_2(%arg0: i32, %arg1: i32) -> (i32, i32, i32) {
    %c0_i32 = arith.constant 0 : i32
    %c0_i32_0 = arith.constant 0 : i32
    %c0_i32_1 = arith.constant 0 : i32
    return %arg0, %c0_i32, %c0_i32_0 : i32, i32, i32
  }
  func.func @transform_3(%arg0: i32, %arg1: i32) -> (i32, i32, i32) {
    %c0_i32 = arith.constant 0 : i32
    %c0_i32_0 = arith.constant 0 : i32
    %c0_i32_1 = arith.constant 0 : i32
    return %arg0, %c0_i32, %c0_i32_0 : i32, i32, i32
  }
  func.func @transform_4(%arg0: i32, %arg1: i32) -> (i32, i32, i32) {
    %c0_i32 = arith.constant 0 : i32
    %c0_i32_0 = arith.constant 0 : i32
    %c0_i32_1 = arith.constant 0 : i32
    return %arg0, %c0_i32, %c0_i32_0 : i32, i32, i32
  }
  func.func @transform_5(%arg0: i32, %arg1: i32) -> (i32, i32, i32, i32) {
    %c0_i32 = arith.constant 0 : i32
    %c0_i32_0 = arith.constant 0 : i32
    %c0_i32_1 = arith.constant 0 : i32
    %c0_i32_2 = arith.constant 0 : i32
    return %arg0, %c0_i32, %c0_i32_0, %c0_i32_1 : i32, i32, i32, i32
  }
  func.func @transform_6(%arg0: i32, %arg1: i32) -> (i32, i32, i32) {
    %c0_i32 = arith.constant 0 : i32
    %c0_i32_0 = arith.constant 0 : i32
    %c0_i32_1 = arith.constant 0 : i32
    %c0_i32_2 = arith.constant 0 : i32
    return %c0_i32, %c0_i32_0, %c0_i32_1 : i32, i32, i32
  }
  func.func @transform_7(%arg0: i32, %arg1: i32) -> (i32, i32, i32) {
    %c0_i32 = arith.constant 0 : i32
    %c0_i32_0 = arith.constant 0 : i32
    %c0_i32_1 = arith.constant 0 : i32
    %c0_i32_2 = arith.constant 0 : i32
    return %c0_i32, %c0_i32_0, %c0_i32_1 : i32, i32, i32
  }
  func.func @transform_8(%arg0: i32, %arg1: i32) -> (i32, i32, i32) {
    %c0_i32 = arith.constant 0 : i32
    %c0_i32_0 = arith.constant 0 : i32
    %c0_i32_1 = arith.constant 0 : i32
    %c0_i32_2 = arith.constant 0 : i32
    return %c0_i32, %c0_i32_0, %c0_i32_1 : i32, i32, i32
  }
  func.func @transform_9(%arg0: i32, %arg1: i32) -> (i32, i32, i32) {
    %c0_i32 = arith.constant 0 : i32
    %c0_i32_0 = arith.constant 0 : i32
    %c0_i32_1 = arith.constant 0 : i32
    %c0_i32_2 = arith.constant 0 : i32
    return %c0_i32, %c0_i32_0, %c0_i32_1 : i32, i32, i32
  }
  func.func @transform_10(%arg0: i32, %arg1: i32) -> (i32, i32, i32) {
    %c0_i32 = arith.constant 0 : i32
    %c0_i32_0 = arith.constant 0 : i32
    %c0_i32_1 = arith.constant 0 : i32
    %c0_i32_2 = arith.constant 0 : i32
    return %c0_i32, %c0_i32_0, %c0_i32_1 : i32, i32, i32
  }
  func.func @transform_11(%arg0: i32, %arg1: i32) -> (i32, i32, i32) {
    %c0_i32 = arith.constant 0 : i32
    %c0_i32_0 = arith.constant 0 : i32
    %c0_i32_1 = arith.constant 0 : i32
    %c0_i32_2 = arith.constant 0 : i32
    return %c0_i32, %c0_i32_0, %c0_i32_1 : i32, i32, i32
  }
  func.func @transform_12(%arg0: i32, %arg1: i32) -> (i32, i32, i32) {
    %c0_i32 = arith.constant 0 : i32
    %c0_i32_0 = arith.constant 0 : i32
    %c0_i32_1 = arith.constant 0 : i32
    %c0_i32_2 = arith.constant 0 : i32
    return %c0_i32, %c0_i32_0, %c0_i32_1 : i32, i32, i32
  }
  func.func @transform_13(%arg0: i32, %arg1: i32) -> (i32, i32, i32) {
    %c0_i32 = arith.constant 0 : i32
    %c0_i32_0 = arith.constant 0 : i32
    %c0_i32_1 = arith.constant 0 : i32
    %c0_i32_2 = arith.constant 0 : i32
    return %c0_i32, %c0_i32_0, %c0_i32_1 : i32, i32, i32
  }
  func.func @transform_14(%arg0: i32, %arg1: i32) -> (i32, i32, i32) {
    %c0_i32 = arith.constant 0 : i32
    %c0_i32_0 = arith.constant 0 : i32
    %c0_i32_1 = arith.constant 0 : i32
    %c0_i32_2 = arith.constant 0 : i32
    return %c0_i32, %c0_i32_0, %c0_i32_1 : i32, i32, i32
  }
  func.func @transform_15(%arg0: i32, %arg1: i32) -> (i32, i32, i32) {
    %c0_i32 = arith.constant 0 : i32
    %c0_i32_0 = arith.constant 0 : i32
    %c0_i32_1 = arith.constant 0 : i32
    %c0_i32_2 = arith.constant 0 : i32
    return %c0_i32, %c0_i32_0, %c0_i32_1 : i32, i32, i32
  }
  func.func @transform_16(%arg0: i32, %arg1: i32) -> (i32, i32, i32) {
    %c0_i32 = arith.constant 0 : i32
    %c0_i32_0 = arith.constant 0 : i32
    %c0_i32_1 = arith.constant 0 : i32
    %c0_i32_2 = arith.constant 0 : i32
    return %c0_i32, %c0_i32_0, %c0_i32_1 : i32, i32, i32
  }
  func.func @transform_17(%arg0: i32, %arg1: i32) -> (i32, i32) {
    %c0_i32 = arith.constant 0 : i32
    %c0_i32_0 = arith.constant 0 : i32
    %c0_i32_1 = arith.constant 0 : i32
    return %c0_i32, %c0_i32_0 : i32, i32
  }
  func.func @transform_18(%arg0: i32, %arg1: i32) -> (i32, i32, i32) {
    %c0_i32 = arith.constant 0 : i32
    %c0_i32_0 = arith.constant 0 : i32
    %c0_i32_1 = arith.constant 0 : i32
    return %arg0, %c0_i32, %c0_i32_0 : i32, i32, i32
  }
  func.func @transform_19(%arg0: i32, %arg1: i32) -> (i32, i32, i32, i32) {
    %c0_i32 = arith.constant 0 : i32
    %c0_i32_0 = arith.constant 0 : i32
    %c0_i32_1 = arith.constant 0 : i32
    return %arg0, %arg1, %c0_i32, %c0_i32_0 : i32, i32, i32, i32
  }
}

module attributes {stable_mosaic.version = 11 : i64} {
  func.func @_dif_mha_kernel(%arg0: i32, %arg1: i32, %arg2: memref<1x8x32xf32, #tpu.memory_space<vmem>>, %arg3: memref<1x8x32xf32, #tpu.memory_space<vmem>>, %arg4: memref<1x8x32xf32, #tpu.memory_space<vmem>>, %arg5: memref<1x8x32xf32, #tpu.memory_space<vmem>>, %arg6: memref<1x8x32xf32, #tpu.memory_space<vmem>>, %arg7: memref<1x1x8x8xf32, #tpu.memory_space<vmem>>, %arg8: memref<2x32x16xf32, #tpu.memory_space<vmem>>, %arg9: memref<2x1x16xf32, #tpu.memory_space<vmem>>, %arg10: memref<2x32x16xf32, #tpu.memory_space<vmem>>, %arg11: memref<2x1x16xf32, #tpu.memory_space<vmem>>, %arg12: memref<2x32x16xf32, #tpu.memory_space<vmem>>, %arg13: memref<2x1x16xf32, #tpu.memory_space<vmem>>, %arg14: memref<2x32x32xf32, #tpu.memory_space<vmem>>, %arg15: memref<2x1x32xf32, #tpu.memory_space<vmem>>, %arg16: memref<2x32x32xf32, #tpu.memory_space<vmem>>, %arg17: memref<2x1x32xf32, #tpu.memory_space<vmem>>, %arg18: memref<2x16x32xf32, #tpu.memory_space<vmem>>, %arg19: memref<1x32xf32, #tpu.memory_space<vmem>>, %arg20: memref<1x8x32xf32, #tpu.memory_space<vmem>>, %arg21: memref<1x1x8x8xf32, #tpu.memory_space<vmem>>, %arg22: memref<8x32xf32, #tpu.memory_space<vmem>>) attributes {dimension_semantics = [#tpu.dimension_semantics<parallel>, #tpu.dimension_semantics<arbitrary>], iteration_bounds = array<i64: 2, 2>, scalar_prefetch = 0 : i64, scratch_operands = 1 : i64, tpu.core_type = #tpu.core_type<tc>, window_params = [{transform_indices = @transform_0, window_bounds = array<i64: 1, 8, 32>}, {transform_indices = @transform_1, window_bounds = array<i64: 1, 8, 32>}, {transform_indices = @transform_2, window_bounds = array<i64: 1, 8, 32>}, {transform_indices = @transform_3, window_bounds = array<i64: 1, 8, 32>}, {transform_indices = @transform_4, window_bounds = array<i64: 1, 8, 32>}, {transform_indices = @transform_5, window_bounds = array<i64: 1, 1, 8, 8>}, {pipeline_mode = #tpu.pipeline_mode<synchronous>, transform_indices = @transform_6, window_bounds = array<i64: 2, 32, 16>}, {pipeline_mode = #tpu.pipeline_mode<synchronous>, transform_indices = @transform_7, window_bounds = array<i64: 2, 1, 16>}, {pipeline_mode = #tpu.pipeline_mode<synchronous>, transform_indices = @transform_8, window_bounds = array<i64: 2, 32, 16>}, {pipeline_mode = #tpu.pipeline_mode<synchronous>, transform_indices = @transform_9, window_bounds = array<i64: 2, 1, 16>}, {pipeline_mode = #tpu.pipeline_mode<synchronous>, transform_indices = @transform_10, window_bounds = array<i64: 2, 32, 16>}, {pipeline_mode = #tpu.pipeline_mode<synchronous>, transform_indices = @transform_11, window_bounds = array<i64: 2, 1, 16>}, {pipeline_mode = #tpu.pipeline_mode<synchronous>, transform_indices = @transform_12, window_bounds = array<i64: 2, 32, 32>}, {pipeline_mode = #tpu.pipeline_mode<synchronous>, transform_indices = @transform_13, window_bounds = array<i64: 2, 1, 32>}, {pipeline_mode = #tpu.pipeline_mode<synchronous>, transform_indices = @transform_14, window_bounds = array<i64: 2, 32, 32>}, {pipeline_mode = #tpu.pipeline_mode<synchronous>, transform_indices = @transform_15, window_bounds = array<i64: 2, 1, 32>}, {pipeline_mode = #tpu.pipeline_mode<synchronous>, transform_indices = @transform_16, window_bounds = array<i64: 2, 16, 32>}, {pipeline_mode = #tpu.pipeline_mode<synchronous>, transform_indices = @transform_17, window_bounds = array<i64: 1, 32>}, {transform_indices = @transform_18, window_bounds = array<i64: 1, 8, 32>}, {transform_indices = @transform_19, window_bounds = array<i64: 1, 1, 8, 8>}]} {
    %c0 = arith.constant 0 : index
    %c0_0 = arith.constant 0 : index
    %c0_1 = arith.constant 0 : index
    %0 = vector.load %arg2[%c0, %c0_0, %c0_1] : memref<1x8x32xf32, #tpu.memory_space<vmem>>, vector<1x8x32xf32>
    %1 = vector.shape_cast %0 : vector<1x8x32xf32> to vector<8x32xf32>
    %c0_2 = arith.constant 0 : index
    %c0_3 = arith.constant 0 : index
    %c0_4 = arith.constant 0 : index
    %2 = vector.load %arg3[%c0_2, %c0_3, %c0_4] : memref<1x8x32xf32, #tpu.memory_space<vmem>>, vector<1x8x32xf32>
    %3 = vector.shape_cast %2 : vector<1x8x32xf32> to vector<8x32xf32>
    %c0_5 = arith.constant 0 : index
    %c0_6 = arith.constant 0 : index
    %c0_7 = arith.constant 0 : index
    %4 = vector.load %arg4[%c0_5, %c0_6, %c0_7] : memref<1x8x32xf32, #tpu.memory_space<vmem>>, vector<1x8x32xf32>
    %5 = vector.shape_cast %4 : vector<1x8x32xf32> to vector<8x32xf32>
    %c0_8 = arith.constant 0 : index
    %c0_9 = arith.constant 0 : index
    %c0_10 = arith.constant 0 : index
    %6 = vector.load %arg5[%c0_8, %c0_9, %c0_10] : memref<1x8x32xf32, #tpu.memory_space<vmem>>, vector<1x8x32xf32>
    %7 = vector.shape_cast %6 : vector<1x8x32xf32> to vector<8x32xf32>
    %c0_11 = arith.constant 0 : index
    %c0_12 = arith.constant 0 : index
    %c0_13 = arith.constant 0 : index
    %8 = vector.load %arg6[%c0_11, %c0_12, %c0_13] : memref<1x8x32xf32, #tpu.memory_space<vmem>>, vector<1x8x32xf32>
    %9 = vector.shape_cast %8 : vector<1x8x32xf32> to vector<8x32xf32>
    %c0_14 = arith.constant 0 : index
    %c0_15 = arith.constant 0 : index
    %c0_16 = arith.constant 0 : index
    %c0_17 = arith.constant 0 : index
    %10 = vector.load %arg7[%c0_14, %c0_15, %c0_16, %c0_17] : memref<1x1x8x8xf32, #tpu.memory_space<vmem>>, vector<1x1x8x8xf32>
    %11 = vector.shape_cast %10 : vector<1x1x8x8xf32> to vector<8x8xf32>
    %12 = arith.index_cast %arg1 : i32 to index
    %c0_18 = arith.constant 0 : index
    %c0_19 = arith.constant 0 : index
    %13 = vector.load %arg8[%12, %c0_18, %c0_19] : memref<2x32x16xf32, #tpu.memory_space<vmem>>, vector<1x32x16xf32>
    %14 = vector.shape_cast %13 : vector<1x32x16xf32> to vector<32x16xf32>
    %cst = arith.constant dense<0.000000e+00> : vector<8x16xf32>
    %15 = tpu.matmul %1, %14, %cst {dimension_numbers = #tpu.dot_dimension_numbers<[1], [0], [0], [1], [0, 0, 1, 1], [], []>} : vector<8x32xf32>, vector<32x16xf32>, vector<8x16xf32> -> vector<8x16xf32>
    %16 = arith.index_cast %arg1 : i32 to index
    %c0_20 = arith.constant 0 : index
    %c0_21 = arith.constant 0 : index
    %17 = vector.load %arg9[%16, %c0_20, %c0_21] : memref<2x1x16xf32, #tpu.memory_space<vmem>>, vector<1x1x16xf32>
    %18 = vector.shape_cast %17 : vector<1x1x16xf32> to vector<1x16xf32>
    %19 = vector.broadcast %18 : vector<1x16xf32> to vector<8x16xf32>
    %20 = arith.addf %15, %19 : vector<8x16xf32>
    %21 = arith.index_cast %arg1 : i32 to index
    %c0_22 = arith.constant 0 : index
    %c0_23 = arith.constant 0 : index
    %22 = vector.load %arg10[%21, %c0_22, %c0_23] : memref<2x32x16xf32, #tpu.memory_space<vmem>>, vector<1x32x16xf32>
    %23 = vector.shape_cast %22 : vector<1x32x16xf32> to vector<32x16xf32>
    %cst_24 = arith.constant dense<0.000000e+00> : vector<8x16xf32>
    %24 = tpu.matmul %3, %23, %cst_24 {dimension_numbers = #tpu.dot_dimension_numbers<[1], [0], [0], [1], [0, 0, 1, 1], [], []>} : vector<8x32xf32>, vector<32x16xf32>, vector<8x16xf32> -> vector<8x16xf32>
    %25 = arith.index_cast %arg1 : i32 to index
    %c0_25 = arith.constant 0 : index
    %c0_26 = arith.constant 0 : index
    %26 = vector.load %arg11[%25, %c0_25, %c0_26] : memref<2x1x16xf32, #tpu.memory_space<vmem>>, vector<1x1x16xf32>
    %27 = vector.shape_cast %26 : vector<1x1x16xf32> to vector<1x16xf32>
    %28 = vector.broadcast %27 : vector<1x16xf32> to vector<8x16xf32>
    %29 = arith.addf %24, %28 : vector<8x16xf32>
    %30 = arith.index_cast %arg1 : i32 to index
    %c0_27 = arith.constant 0 : index
    %c0_28 = arith.constant 0 : index
    %31 = vector.load %arg12[%30, %c0_27, %c0_28] : memref<2x32x16xf32, #tpu.memory_space<vmem>>, vector<1x32x16xf32>
    %32 = vector.shape_cast %31 : vector<1x32x16xf32> to vector<32x16xf32>
    %cst_29 = arith.constant dense<0.000000e+00> : vector<8x16xf32>
    %33 = tpu.matmul %5, %32, %cst_29 {dimension_numbers = #tpu.dot_dimension_numbers<[1], [0], [0], [1], [0, 0, 1, 1], [], []>} : vector<8x32xf32>, vector<32x16xf32>, vector<8x16xf32> -> vector<8x16xf32>
    %34 = arith.index_cast %arg1 : i32 to index
    %c0_30 = arith.constant 0 : index
    %c0_31 = arith.constant 0 : index
    %35 = vector.load %arg13[%34, %c0_30, %c0_31] : memref<2x1x16xf32, #tpu.memory_space<vmem>>, vector<1x1x16xf32>
    %36 = vector.shape_cast %35 : vector<1x1x16xf32> to vector<1x16xf32>
    %37 = vector.broadcast %36 : vector<1x16xf32> to vector<8x16xf32>
    %38 = arith.addf %33, %37 : vector<8x16xf32>
    %39 = arith.index_cast %arg1 : i32 to index
    %c0_32 = arith.constant 0 : index
    %c0_33 = arith.constant 0 : index
    %40 = vector.load %arg14[%39, %c0_32, %c0_33] : memref<2x32x32xf32, #tpu.memory_space<vmem>>, vector<1x32x32xf32>
    %41 = vector.shape_cast %40 : vector<1x32x32xf32> to vector<32x32xf32>
    %cst_34 = arith.constant dense<0.000000e+00> : vector<8x32xf32>
    %42 = tpu.matmul %7, %41, %cst_34 {dimension_numbers = #tpu.dot_dimension_numbers<[1], [0], [0], [1], [0, 0, 1, 1], [], []>} : vector<8x32xf32>, vector<32x32xf32>, vector<8x32xf32> -> vector<8x32xf32>
    %43 = arith.index_cast %arg1 : i32 to index
    %c0_35 = arith.constant 0 : index
    %c0_36 = arith.constant 0 : index
    %44 = vector.load %arg15[%43, %c0_35, %c0_36] : memref<2x1x32xf32, #tpu.memory_space<vmem>>, vector<1x1x32xf32>
    %45 = vector.shape_cast %44 : vector<1x1x32xf32> to vector<1x32xf32>
    %46 = vector.broadcast %45 : vector<1x32xf32> to vector<8x32xf32>
    %47 = arith.addf %42, %46 : vector<8x32xf32>
    %48 = arith.index_cast %arg1 : i32 to index
    %c0_37 = arith.constant 0 : index
    %c0_38 = arith.constant 0 : index
    %49 = vector.load %arg16[%48, %c0_37, %c0_38] : memref<2x32x32xf32, #tpu.memory_space<vmem>>, vector<1x32x32xf32>
    %50 = vector.shape_cast %49 : vector<1x32x32xf32> to vector<32x32xf32>
    %cst_39 = arith.constant dense<0.000000e+00> : vector<8x32xf32>
    %51 = tpu.matmul %9, %50, %cst_39 {dimension_numbers = #tpu.dot_dimension_numbers<[1], [0], [0], [1], [0, 0, 1, 1], [], []>} : vector<8x32xf32>, vector<32x32xf32>, vector<8x32xf32> -> vector<8x32xf32>
    %52 = arith.index_cast %arg1 : i32 to index
    %c0_40 = arith.constant 0 : index
    %c0_41 = arith.constant 0 : index
    %53 = vector.load %arg17[%52, %c0_40, %c0_41] : memref<2x1x32xf32, #tpu.memory_space<vmem>>, vector<1x1x32xf32>
    %54 = vector.shape_cast %53 : vector<1x1x32xf32> to vector<1x32xf32>
    %55 = vector.broadcast %54 : vector<1x32xf32> to vector<8x32xf32>
    %56 = arith.addf %51, %55 : vector<8x32xf32>
    %57 = arith.index_cast %arg1 : i32 to index
    %c0_42 = arith.constant 0 : index
    %c0_43 = arith.constant 0 : index
    %58 = vector.load %arg18[%57, %c0_42, %c0_43] : memref<2x16x32xf32, #tpu.memory_space<vmem>>, vector<1x16x32xf32>
    %59 = vector.shape_cast %58 : vector<1x16x32xf32> to vector<16x32xf32>
    %c0_i32 = arith.constant 0 : i32
    %60 = arith.cmpi eq, %arg1, %c0_i32 : i32
    %61 = arith.extui %60 : i1 to i32
    %c0_i32_44 = arith.constant 0 : i32
    %62 = arith.cmpi ne, %61, %c0_i32_44 : i32
    scf.if %62 {
      %cst_62 = arith.constant 0.000000e+00 : f32
      %96 = vector.broadcast %cst_62 : f32 to vector<8x32xf32>
      %c0_63 = arith.constant 0 : index
      %c0_64 = arith.constant 0 : index
      %97 = vector.load %arg22[%c0_63, %c0_64] : memref<8x32xf32, #tpu.memory_space<vmem>>, vector<8x32xf32>
      tpu.vector_store %arg22[%c0_63, %c0_64], %96 {strides = array<i32>} : memref<8x32xf32, #tpu.memory_space<vmem>>, vector<8x32xf32>,
    } else {
    }
    %cst_45 = arith.constant dense<0.000000e+00> : vector<8x8xf32>
    %63 = tpu.matmul %20, %29, %cst_45 {dimension_numbers = #tpu.dot_dimension_numbers<[1], [1], [0], [0], [0, 0, 1, 0], [], []>} : vector<8x16xf32>, vector<8x16xf32>, vector<8x8xf32> -> vector<8x8xf32>
    %64 = vector.extract_strided_slice %47 {offsets = [0, 0], sizes = [8, 16], strides = [1, 1]} : vector<8x32xf32> to vector<8x16xf32>
    %65 = vector.extract_strided_slice %47 {offsets = [0, 16], sizes = [8, 16], strides = [1, 1]} : vector<8x32xf32> to vector<8x16xf32>
    %cst_46 = arith.constant dense<0.000000e+00> : vector<8x8xf32>
    %66 = tpu.matmul %64, %65, %cst_46 {dimension_numbers = #tpu.dot_dimension_numbers<[1], [1], [0], [0], [0, 0, 1, 0], [], []>} : vector<8x16xf32>, vector<8x16xf32>, vector<8x8xf32> -> vector<8x8xf32>
    %67 = vector.extract_strided_slice %56 {offsets = [0, 0], sizes = [8, 16], strides = [1, 1]} : vector<8x32xf32> to vector<8x16xf32>
    %68 = vector.extract_strided_slice %56 {offsets = [0, 16], sizes = [8, 16], strides = [1, 1]} : vector<8x32xf32> to vector<8x16xf32>
    %cst_47 = arith.constant dense<0.000000e+00> : vector<8x8xf32>
    %69 = tpu.matmul %67, %68, %cst_47 {dimension_numbers = #tpu.dot_dimension_numbers<[1], [1], [0], [0], [0, 0, 1, 0], [], []>} : vector<8x16xf32>, vector<8x16xf32>, vector<8x8xf32> -> vector<8x8xf32>
    %cst_48 = arith.constant 2.500000e-01 : f32
    %70 = vector.broadcast %cst_48 : f32 to vector<8x8xf32>
    %71 = arith.mulf %63, %70 : vector<8x8xf32>
    %72 = arith.addf %71, %66 : vector<8x8xf32>
    %73 = arith.addf %72, %69 : vector<8x8xf32>
    %74 = arith.addf %73, %11 : vector<8x8xf32>
    %cst_49 = arith.constant dense<0xFF800000> : vector<8xf32>
    %75 = vector.multi_reduction <maximumf>, %74, %cst_49 [1] : vector<8x8xf32> to vector<8xf32>
    %76 = vector.shape_cast %75 : vector<8xf32> to vector<8x1xf32>
    %77 = vector.broadcast %76 : vector<8x1xf32> to vector<8x8xf32>
    %78 = arith.subf %74, %77 : vector<8x8xf32>
    %79 = math.exp %78 : vector<8x8xf32>
    %cst_50 = arith.constant dense<0.000000e+00> : vector<8xf32>
    %80 = vector.multi_reduction <add>, %79, %cst_50 [1] : vector<8x8xf32> to vector<8xf32>
    %81 = vector.shape_cast %80 : vector<8xf32> to vector<8x1xf32>
    %82 = tpu.reciprocal %81 : vector<8x1xf32> -> vector<8x1xf32>
    %83 = vector.broadcast %82 : vector<8x1xf32> to vector<8x8xf32>
    %84 = arith.mulf %79, %83 : vector<8x8xf32>
    %cst_51 = arith.constant dense<0.000000e+00> : vector<8x16xf32>
    %85 = tpu.matmul %84, %38, %cst_51 {dimension_numbers = #tpu.dot_dimension_numbers<[1], [0], [0], [1], [0, 0, 1, 1], [], []>} : vector<8x8xf32>, vector<8x16xf32>, vector<8x16xf32> -> vector<8x16xf32>
    %c0_52 = arith.constant 0 : index
    %c0_53 = arith.constant 0 : index
    %c0_54 = arith.constant 0 : index
    %c0_55 = arith.constant 0 : index
    %86 = vector.load %arg21[%c0_52, %c0_53, %c0_54, %c0_55] : memref<1x1x8x8xf32, #tpu.memory_space<vmem>>, vector<1x1x8x8xf32>
    %87 = vector.shape_cast %86 : vector<1x1x8x8xf32> to vector<8x8xf32>
    %88 = vector.shape_cast %63 : vector<8x8xf32> to vector<1x1x8x8xf32>
    tpu.vector_store %arg21[%c0_52, %c0_53, %c0_54, %c0_55], %88 {strides = array<i32>} : memref<1x1x8x8xf32, #tpu.memory_space<vmem>>, vector<1x1x8x8xf32>,
    %c0_56 = arith.constant 0 : index
    %c0_57 = arith.constant 0 : index
    %89 = vector.load %arg22[%c0_56, %c0_57] : memref<8x32xf32, #tpu.memory_space<vmem>>, vector<8x32xf32>
    %cst_58 = arith.constant dense<0.000000e+00> : vector<8x32xf32>
    %90 = tpu.matmul %85, %59, %cst_58 {dimension_numbers = #tpu.dot_dimension_numbers<[1], [0], [0], [1], [0, 0, 1, 1], [], []>} : vector<8x16xf32>, vector<16x32xf32>, vector<8x32xf32> -> vector<8x32xf32>
    %91 = arith.addf %89, %90 : vector<8x32xf32>
    %c0_59 = arith.constant 0 : index
    %c0_60 = arith.constant 0 : index
    %92 = vector.load %arg22[%c0_59, %c0_60] : memref<8x32xf32, #tpu.memory_space<vmem>>, vector<8x32xf32>
    tpu.vector_store %arg22[%c0_59, %c0_60], %91 {strides = array<i32>} : memref<8x32xf32, #tpu.memory_space<vmem>>, vector<8x32xf32>,
    %c1_i32 = arith.constant 1 : i32
    %93 = arith.cmpi eq, %arg1, %c1_i32 : i32
    %94 = arith.extui %93 : i1 to i32
    %c0_i32_61 = arith.constant 0 : i32
    %95 = arith.cmpi ne, %94, %c0_i32_61 : i32
    scf.if %95 {
      %c0_62 = arith.constant 0 : index
      %c0_63 = arith.constant 0 : index
      %96 = vector.load %arg22[%c0_62, %c0_63] : memref<8x32xf32, #tpu.memory_space<vmem>>, vector<8x32xf32>
      %c0_64 = arith.constant 0 : index
      %c0_65 = arith.constant 0 : index
      %97 = vector.load %arg19[%c0_64, %c0_65] : memref<1x32xf32, #tpu.memory_space<vmem>>, vector<1x32xf32>
      %98 = vector.broadcast %97 : vector<1x32xf32> to vector<8x32xf32>
      %99 = arith.addf %96, %98 : vector<8x32xf32>
      %c0_66 = arith.constant 0 : index
      %c0_67 = arith.constant 0 : index
      %c0_68 = arith.constant 0 : index
      %100 = vector.load %arg20[%c0_66, %c0_67, %c0_68] : memref<1x8x32xf32, #tpu.memory_space<vmem>>, vector<1x8x32xf32>
      %101 = vector.shape_cast %100 : vector<1x8x32xf32> to vector<8x32xf32>
      %102 = vector.shape_cast %99 : vector<8x32xf32> to vector<1x8x32xf32>
      tpu.vector_store %arg20[%c0_66, %c0_67, %c0_68], %102 {strides = array<i32>} : memref<1x8x32xf32, #tpu.memory_space<vmem>>, vector<1x8x32xf32>,
    } else {
    }
    return
  }
  func.func @transform_0(%arg0: i32, %arg1: i32) -> (i32, i32, i32) {
    %c0_i32 = arith.constant 0 : i32
    %c0_i32_0 = arith.constant 0 : i32
    %c0_i32_1 = arith.constant 0 : i32
    return %arg0, %c0_i32, %c0_i32_0 : i32, i32, i32
  }
  func.func @transform_1(%arg0: i32, %arg1: i32) -> (i32, i32, i32) {
    %c0_i32 = arith.constant 0 : i32
    %c0_i32_0 = arith.constant 0 : i32
    %c0_i32_1 = arith.constant 0 : i32
    return %arg0, %c0_i32, %c0_i32_0 : i32, i32, i32
  }
  func.func @transform_2(%arg0: i32, %arg1: i32) -> (i32, i32, i32) {
    %c0_i32 = arith.constant 0 : i32
    %c0_i32_0 = arith.constant 0 : i32
    %c0_i32_1 = arith.constant 0 : i32
    return %arg0, %c0_i32, %c0_i32_0 : i32, i32, i32
  }
  func.func @transform_3(%arg0: i32, %arg1: i32) -> (i32, i32, i32) {
    %c0_i32 = arith.constant 0 : i32
    %c0_i32_0 = arith.constant 0 : i32
    %c0_i32_1 = arith.constant 0 : i32
    return %arg0, %c0_i32, %c0_i32_0 : i32, i32, i32
  }
  func.func @transform_4(%arg0: i32, %arg1: i32) -> (i32, i32, i32) {
    %c0_i32 = arith.constant 0 : i32
    %c0_i32_0 = arith.constant 0 : i32
    %c0_i32_1 = arith.constant 0 : i32
    return %arg0, %c0_i32, %c0_i32_0 : i32, i32, i32
  }
  func.func @transform_5(%arg0: i32, %arg1: i32) -> (i32, i32, i32, i32) {
    %c0_i32 = arith.constant 0 : i32
    %c0_i32_0 = arith.constant 0 : i32
    %c0_i32_1 = arith.constant 0 : i32
    %c0_i32_2 = arith.constant 0 : i32
    return %arg0, %c0_i32, %c0_i32_0, %c0_i32_1 : i32, i32, i32, i32
  }
  func.func @transform_6(%arg0: i32, %arg1: i32) -> (i32, i32, i32) {
    %c0_i32 = arith.constant 0 : i32
    %c0_i32_0 = arith.constant 0 : i32
    %c0_i32_1 = arith.constant 0 : i32
    %c0_i32_2 = arith.constant 0 : i32
    return %c0_i32, %c0_i32_0, %c0_i32_1 : i32, i32, i32
  }
  func.func @transform_7(%arg0: i32, %arg1: i32) -> (i32, i32, i32) {
    %c0_i32 = arith.constant 0 : i32
    %c0_i32_0 = arith.constant 0 : i32
    %c0_i32_1 = arith.constant 0 : i32
    %c0_i32_2 = arith.constant 0 : i32
    return %c0_i32, %c0_i32_0, %c0_i32_1 : i32, i32, i32
  }
  func.func @transform_8(%arg0: i32, %arg1: i32) -> (i32, i32, i32) {
    %c0_i32 = arith.constant 0 : i32
    %c0_i32_0 = arith.constant 0 : i32
    %c0_i32_1 = arith.constant 0 : i32
    %c0_i32_2 = arith.constant 0 : i32
    return %c0_i32, %c0_i32_0, %c0_i32_1 : i32, i32, i32
  }
  func.func @transform_9(%arg0: i32, %arg1: i32) -> (i32, i32, i32) {
    %c0_i32 = arith.constant 0 : i32
    %c0_i32_0 = arith.constant 0 : i32
    %c0_i32_1 = arith.constant 0 : i32
    %c0_i32_2 = arith.constant 0 : i32
    return %c0_i32, %c0_i32_0, %c0_i32_1 : i32, i32, i32
  }
  func.func @transform_10(%arg0: i32, %arg1: i32) -> (i32, i32, i32) {
    %c0_i32 = arith.constant 0 : i32
    %c0_i32_0 = arith.constant 0 : i32
    %c0_i32_1 = arith.constant 0 : i32
    %c0_i32_2 = arith.constant 0 : i32
    return %c0_i32, %c0_i32_0, %c0_i32_1 : i32, i32, i32
  }
  func.func @transform_11(%arg0: i32, %arg1: i32) -> (i32, i32, i32) {
    %c0_i32 = arith.constant 0 : i32
    %c0_i32_0 = arith.constant 0 : i32
    %c0_i32_1 = arith.constant 0 : i32
    %c0_i32_2 = arith.constant 0 : i32
    return %c0_i32, %c0_i32_0, %c0_i32_1 : i32, i32, i32
  }
  func.func @transform_12(%arg0: i32, %arg1: i32) -> (i32, i32, i32) {
    %c0_i32 = arith.constant 0 : i32
    %c0_i32_0 = arith.constant 0 : i32
    %c0_i32_1 = arith.constant 0 : i32
    %c0_i32_2 = arith.constant 0 : i32
    return %c0_i32, %c0_i32_0, %c0_i32_1 : i32, i32, i32
  }
  func.func @transform_13(%arg0: i32, %arg1: i32) -> (i32, i32, i32) {
    %c0_i32 = arith.constant 0 : i32
    %c0_i32_0 = arith.constant 0 : i32
    %c0_i32_1 = arith.constant 0 : i32
    %c0_i32_2 = arith.constant 0 : i32
    return %c0_i32, %c0_i32_0, %c0_i32_1 : i32, i32, i32
  }
  func.func @transform_14(%arg0: i32, %arg1: i32) -> (i32, i32, i32) {
    %c0_i32 = arith.constant 0 : i32
    %c0_i32_0 = arith.constant 0 : i32
    %c0_i32_1 = arith.constant 0 : i32
    %c0_i32_2 = arith.constant 0 : i32
    return %c0_i32, %c0_i32_0, %c0_i32_1 : i32, i32, i32
  }
  func.func @transform_15(%arg0: i32, %arg1: i32) -> (i32, i32, i32) {
    %c0_i32 = arith.constant 0 : i32
    %c0_i32_0 = arith.constant 0 : i32
    %c0_i32_1 = arith.constant 0 : i32
    %c0_i32_2 = arith.constant 0 : i32
    return %c0_i32, %c0_i32_0, %c0_i32_1 : i32, i32, i32
  }
  func.func @transform_16(%arg0: i32, %arg1: i32) -> (i32, i32, i32) {
    %c0_i32 = arith.constant 0 : i32
    %c0_i32_0 = arith.constant 0 : i32
    %c0_i32_1 = arith.constant 0 : i32
    %c0_i32_2 = arith.constant 0 : i32
    return %c0_i32, %c0_i32_0, %c0_i32_1 : i32, i32, i32
  }
  func.func @transform_17(%arg0: i32, %arg1: i32) -> (i32, i32) {
    %c0_i32 = arith.constant 0 : i32
    %c0_i32_0 = arith.constant 0 : i32
    %c0_i32_1 = arith.constant 0 : i32
    return %c0_i32, %c0_i32_0 : i32, i32
  }
  func.func @transform_18(%arg0: i32, %arg1: i32) -> (i32, i32, i32) {
    %c0_i32 = arith.constant 0 : i32
    %c0_i32_0 = arith.constant 0 : i32
    %c0_i32_1 = arith.constant 0 : i32
    return %arg0, %c0_i32, %c0_i32_0 : i32, i32, i32
  }
  func.func @transform_19(%arg0: i32, %arg1: i32) -> (i32, i32, i32, i32) {
    %c0_i32 = arith.constant 0 : i32
    %c0_i32_0 = arith.constant 0 : i32
    %c0_i32_1 = arith.constant 0 : i32
    return %arg0, %arg1, %c0_i32, %c0_i32_0 : i32, i32, i32, i32
  }
}

</mosaic_0001>

<bundles_post_ra>
// kernel: tpu_custom_call.1
= control target key start
LH: loop header
LB: loop body
LE: loop exit
PB: predicated region body
PF: predicated region fallthrough
CT: control target
= control target key end

     0   :  { %s2886_s0 = inlined_call_operand.vmem [shape: f32[2,8,32], index: 0, kind: input, shape index: {}]   ;;  %s2887_s1 = inlined_call_operand.vmem [shape: f32[2,8,32], index: 1, kind: input, shape index: {}]   ;;  %s2888_s2 = inlined_call_operand.vmem [shape: f32[2,8,32], index: 2, kind: input, shape index: {}]   ;;  %s2889_s3 = inlined_call_operand.vmem [shape: f32[2,8,32], index: 3, kind: input, shape index: {}]   ;;  %s2890_s4 = inlined_call_operand.hbm [shape: f32[2,8,32], index: 4, kind: input, shape index: {}]   ;;  %s2891_s5 = inlined_call_operand.hbm [shape: f32[2,1,8,8], index: 5, kind: input, shape index: {}]   ;;  %s2892_s6 = inlined_call_operand.vmem [shape: f32[2,32,16], index: 6, kind: input, shape index: {}]   ;;  %s2893_s7 = inlined_call_operand.vmem [shape: f32[2,1,16], index: 7, kind: input, shape index: {}]   ;;  %s2894_s8 = inlined_call_operand.vmem [shape: f32[2,32,16], index: 8, kind: input, shape index: {}]   ;;  %s2895_s9 = inlined_call_operand.vmem [shape: f32[2,1,16], index: 9, kind: input, shape index: {}]   ;;  %s2896_s10 = inlined_call_operand.vmem [shape: f32[2,32,16], index: 10, kind: input, shape index: {}]   ;;  %s2897_s11 = inlined_call_operand.vmem [shape: f32[2,1,16], index: 11, kind: input, shape index: {}]   ;;  %s2898_s12 = inlined_call_operand.vmem [shape: f32[2,32,32], index: 12, kind: input, shape index: {}]   ;;  %s2899_s13 = inlined_call_operand.vmem [shape: f32[2,1,32], index: 13, kind: input, shape index: {}]   ;;  %s2900_s14 = inlined_call_operand.vmem [shape: f32[2,32,32], index: 14, kind: input, shape index: {}]   ;;  %s2901_s15 = inlined_call_operand.vmem [shape: f32[2,1,32], index: 15, kind: input, shape index: {}]   ;;  %s2902_s16 = inlined_call_operand.vmem [shape: f32[2,16,32], index: 16, kind: input, shape index: {}]   ;;  %s2903_s17 = inlined_call_operand.vmem [shape: f32[1,32], index: 17, kind: input, shape index: {}]   ;;  %s2904_s18 = inlined_call_operand.hbm [shape: f32[2,8,32], index: 18, kind: output, shape index: {0}]   ;;  %s2905_s19 = inlined_call_operand.hbm [shape: f32[2,2,8,8], index: 19, kind: output, shape index: {1}]  }
   0x1   :  { %2919 = sst [smem:[#allocation25_spill]] %s2886_s0 }
   0x2   :  { %2920 = sst [smem:[#allocation26_spill]] %s2887_s1 }
   0x3   :  { %2921 = sst [smem:[#allocation27_spill]] %s2888_s2 }
   0x4   :  { %2922 = sst [smem:[#allocation28_spill]] %s2889_s3 }
   0x5   :  { %2923 = sst [smem:[#allocation29_spill]] %s2890_s4 }
   0x6   :  { %2924 = sst [smem:[#allocation30_spill]] %s2891_s5 }
   0x7   :  { %2925 = sst [smem:[#allocation31_spill]] %s2892_s6 }
   0x8   :  { %2926 = sst [smem:[#allocation32_spill]] %s2893_s7 }
   0x9   :  { %2927 = sst [smem:[#allocation33_spill]] %s2894_s8 }
   0xa   :  { %2928 = sst [smem:[#allocation34_spill]] %s2895_s9 }
   0xb   :  { %2929 = sst [smem:[#allocation35_spill]] %s2896_s10 }
   0xc   :  { %2930 = sst [smem:[#allocation36_spill]] %s2897_s11 }
   0xd   :  { %2931 = sst [smem:[#allocation37_spill]] %s2899_s13 }
   0xe   :  { %2932 = sst [smem:[#allocation38_spill]] %s2900_s14 }
   0xf   :  { %2933 = sst [smem:[#allocation39_spill]] %s2901_s15 }
  0x10   :  { %2934 = sst [smem:[#allocation40_spill]] %s2903_s17 }
  0x11   :  { %2935 = sst [smem:[#allocation41_spill]] %s2904_s18 }
  0x12   :  { %2936 = sst [smem:[#allocation42_spill]] %s2905_s19 }
  0x13   :  { %25 = vsyncpa [#allocation4], 0 }
  0x14   :  { %27 = vsyncpa [#allocation4 + $0x1], 0 }
  0x15   :  { %28 = vsyncpa [#allocation7], 0 }
  0x16   :  { %30 = vsyncpa [#allocation7 + $0x1], 0 }
  0x17   :  { %31 = vsyncpa [#allocation5], 0 }
  0x18   :  { %33 = vsyncpa [#allocation5 + $0x1], 0 }
  0x19   :  { %34 = vsyncpa [#allocation10], 0 }
  0x1a   :  { %36 = vsyncpa [#allocation10 + $0x1], 0  ;;  %s2448_s0 = smov 0   ;;  %s2450_s30 = smov 0  }
  0x1b   :  { %s2452_s20 = smov 0   ;;  %s2454_s21 = smov 0  }
  0x1c   :  { %s2456_s1 = smov 0   ;;  %s2458_s22 = smov 0  }
  0x1d   :  { %s2460_s2 = smov 0   ;;  %s2462_s23 = smov 0  }
  0x1e   :  { %s2464_s24 = smov 0   ;;  %s2466_s25 = smov 0  }
  0x1f   :  { %s2468_s3 = smov 0  }
  0x20 LB: > { %2937 = sst [smem:[#allocation15_spill]] %s2306_s20  ;;  %s1843_s26 = sadd.s32 4294967295, %s2338_s3   ;;  %s2338_s3 = sphi %s2468_s3, %s42_s3   ;;  %s2334_s25 = sphi %s2466_s25, %s2990_s25   ;;  %s2330_s24 = sphi %s2464_s24, %s2989_s24   ;;  %s2326_s23 = sphi %s2462_s23, %s2988_s23   ;;  %s2322_s2 = sphi %s2460_s2, %s2987_s2   ;;  %s2318_s22 = sphi %s2458_s22, %s2986_s22   ;;  %s2314_s1 = sphi %s2456_s1, %s2994_s1   ;;  %s2310_s21 = sphi %s2454_s21, %s2993_s21   ;;  %s2306_s20 = sphi %s2452_s20, %s2984_s20   ;;  %s2302_s30 = sphi %s2450_s30, %s2992_s30   ;;  %s2298_s0 = sphi %s2448_s0, %s2991_s0  }
  0x21   : > { %2938 = sst [smem:[#allocation16_spill]] %s2310_s21  ;;  %s1844_s27 = sadd.s32 4294967294, %s2338_s3  }
  0x22   : > { %2939 = sst [smem:[#allocation17_spill]] %s2318_s22  ;;  %s51_s28 = sadd.s32 1, %s2330_s24 }
  0x23   : > { %2940 = sst [smem:[#allocation18_spill]] %s2330_s24  ;;  %s54_s29 = sadd.s32 1, %s2334_s25 }
  0x24   : > { %2941 = sst [smem:[#allocation19_spill]] %s2334_s25  ;;  %p52_p0 = scmp.ge.s32.totalorder %s51_s28, 2 }
  0x25   : > { %s165_s19 = sadd.s32 1, %s2318_s22  ;;  %p172_p1 = scmp.ne.s32.totalorder %s2318_s22, %s2314_s1 }
  0x26   : > { %p173_p2 = scmp.eq.s32.totalorder %s2338_s3, 0  ;;  %s2996_s28 = smov (%p52_p0, %s51_s28), 0 }
  0x27   : > { %2942 = sst [smem:[#allocation20_spill]] %s2996_s28  ;;  %s2998_s29 = smov (!%p52_p0, %s54_s29), %s2334_s25 }
  0x28   : > { %p2514_p3 = por %p173_p2, %p172_p1  ;;  %p178_p4 = scmp.ne.s32.totalorder %s2314_s1, %s2310_s21 }
  0x29   : > { %p56_p5 = scmp.ge.s32.totalorder %s2998_s29, 2  ;;  %p179_p6 = scmp.eq.s32.totalorder %s1843_s26, 0 }
  0x2a   : > { %p2520_p7 = scmp.eq.s32.totalorder %s1843_s26, 3  ;;  %p2524_p8 = scmp.eq.s32.totalorder %s1844_s27, 3 }
  0x2b   : > { %s3000_s29 = smov (%p56_p5, %s2998_s29), 0  ;;  %p2530_p9 = por %p179_p6, %p178_p4 }
  0x2c   : > { %2946 = sst [smem:[#allocation21_spill]] %s3000_s29  ;;  %p2536_p10 = por %p2520_p7, %p172_p1 }
  0x2d   : > { %s162_s27 = ssub.s32 %s2334_s25, %s3000_s29  ;;  %p2544_p11 = por %p2524_p8, %p178_p4 }
  0x2e   : > { %s2948_s26 = scalar_select %p2536_p10, 1, 0 }
  0x2f   : > { %s2950_s13 = scalar_select %p2544_p11, 1, 0 }
  0x30   : > { %2949 = sst [smem:[#allocation22_spill]] %s2948_s26  ;;  %p163_p12 = scmp.eq.s32.totalorder %s162_s27, 0 }
  0x31   : > { %s493_s11 = ssub.s32 %s2330_s24, %s2996_s28  ;;  %s497_s7 = sadd.s32 1, %s2306_s20 }
  0x32   : > { %s494_s9 = sor.u32 %s493_s11, %s162_s27  ;;  %p507_p0 = scmp.ne.s32.totalorder %s2306_s20, %s2302_s30 }
  0x33   : > { %s2552_s14 = scalar_select %p163_p12, %s2318_s22, %s165_s19  }
  0x34   : > { %p495_p13 = scmp.eq.s32.totalorder %s494_s9, 0  ;;  %p513_p1 = scmp.ne.s32.totalorder %s2302_s30, %s2298_s0 }
  0x35   : > { %2951 = sst [smem:[#allocation23_spill]] %s2552_s14  ;;  %p2563_p2 = por %p507_p0, %p2520_p7 }
  0x36   : > { %s2559_s26 = scalar_select %p495_p13, %s2306_s20, %s497_s7  }
  0x37   : > { %p2569_p4 = por %p513_p1, %p2524_p8  ;;  %p2030_p5 = scmp.lt.s32.totalorder %s2338_s3, 4 }
  0x38   : > { %2952 = sst [smem:[#allocation24_spill]] %s2559_s26  ;;  %s2575_s11 = sand.u32 1, %s2318_s22  }
  0x39   : > { %s2954_s28 = scalar_select %p2569_p4, 1, 0 }
  0x3a   : > { %s1847_s9 = sshll.u32 %s2575_s11, 3  ;;  %s1848_s19 = sshll.u32 %s2334_s25, 7 }
  0x3b   : > { %s2955_s4 = sld [smem:[#allocation29_spill]]  ;;  %s602_s24 = scalar_lea.vmem [#allocation3], %s1847_s9 }
  0x3c   : > { %s609_s14 = sshll.u32 %s602_s24, 4  ;;  %p2584_p6 = pnand %p2030_p5, %p2514_p3  ;;  %s610_s14 = int_to_ptr.vmem [resolvable:$true] %s609_s14 }
  0x3d   : > { %p1851_p7 = scmp.ge.s32.totalorder %s2338_s3, 1  ;;  %p632_p8 = scmp.lt.s32.totalorder %s2338_s3, 5 }
  0x3e   : > { %s599_s22 = scalar_lea.sflag [#allocation4], %s2575_s11  ;;  %p2130_p12 = pneg %p2584_p6 }
  0x3f   : > { %s2141_s25 = scalar_lea.vmem %s610_s14, 128  ;;  %s2340_s24 = smov [#allocation3]  }
  0x40   : > { %p2142_p13 = scmp.ne.s32.totalorder %s610_s14, %s2141_s25  ;;  %s2146_s27 = sshll.u32 %s2340_s24, 4  ;;  %s2147_s27 = int_to_ptr.vmem [resolvable:$false] %s2146_s27 }
  0x41   : > { %s607_s17 = scalar_lea.hbm %s2955_s4, %s1848_s19  ;;  %s2148_s18 = scalar_lea.vmem %s2147_s27, 256 }
  0x42   : > { %p2144_p0 = pnand %p2142_p13, %p2130_p12  ;;  %p2149_p3 = scmp.lt.s32.totalorder %s610_s14, %s2147_s27 }
  0x43   : > { %p2150_p5 = scmp.lt.s32.totalorder %s2148_s18, %s2141_s25 }
  0x44   : > { %p2145_p1 = pneg %p2144_p0 }
  0x45   : > { %p2151_p4 = por %p2150_p5, %p2149_p3 }
  0x47   : > { %p2152_p11 = pnand %p2151_p4, %p2145_p1 }
  0x49   : > { %2155 = shalt.err (!%p2152_p11)
}
  0x4a   : > { %2019 = dma.hbm_to_vmem [thread:$0]  (!%p2584_p6), %s607_s17, 128, %s610_s14, %s599_s22  }
  0x4b   : > { %p2602_p13 = pnand %p1851_p7, %p632_p8  ;;  %s2958_s5 = sld [smem:[#allocation30_spill]] }
  0x4c   : > { %s620_s27 = scalar_lea.vmem [#allocation6], %s1847_s9  ;;  %s617_s26 = scalar_lea.sflag [#allocation7], %s2575_s11 }
  0x4d   : > { %s627_s18 = sshll.u32 %s620_s27, 4  ;;  %s2341_s14 = smov [#allocation6]   ;;  %s628_s18 = int_to_ptr.vmem [resolvable:$true] %s627_s18 }
  0x4e   : > { %s2169_s20 = scalar_lea.vmem %s628_s18, 128  ;;  %s2174_s22 = sshll.u32 %s2341_s14, 4  ;;  %s2175_s22 = int_to_ptr.vmem [resolvable:$false] %s2174_s22 }
  0x4f   : > { %p2170_p11 = scmp.ne.s32.totalorder %s628_s18, %s2169_s20  ;;  %s2176_s17 = scalar_lea.vmem %s2175_s22, 256 }
  0x50   : > { %p2177_p7 = scmp.lt.s32.totalorder %s628_s18, %s2175_s22  ;;  %p2178_p8 = scmp.lt.s32.totalorder %s2176_s17, %s2169_s20 }
  0x51   : > { %s625_s25 = scalar_lea.hbm %s2958_s5, %s1848_s19  ;;  %p2172_p4 = pnand %p2170_p11, %p2130_p12 }
  0x52   : > { %p2179_p1 = por %p2178_p8, %p2177_p7 }
  0x53   : > { %p2173_p0 = pneg %p2172_p4 }
  0x55   : > { %p2180_p3 = pnand %p2179_p1, %p2173_p0 }
  0x57   : > { %2183 = shalt.err (!%p2180_p3)
}
  0x58   : > { %2022 = dma.hbm_to_vmem [thread:$0]  (!%p2584_p6), %s625_s25, 128, %s628_s18, %s617_s26  }
  0x59   : > { %636 = sbr.rel (%p2602_p13) target bundleno = 1409 (0x581), region = 92  ;;  %s2618_s4 = sand.u32 (!%p2602_p13), 1, %s2314_s1  }
  0x5a   : > { %s2621_s11 = sshll.u32 (!%p2602_p13), %s2618_s4, 3  ;;  %s639_s9 = scalar_lea.sflag (!%p2602_p13), [#allocation4], %s2618_s4 }
  0x5e   : > { %2281 = dma.done.wait (%p2530_p9), %s639_s9, 128  }
  0x5f   : > { %2283 = vsyncadd (%p2530_p9), %s639_s9, 4294967168  ;;  %s648_s26 = scalar_lea.sflag [#allocation7], %s2618_s4  ;;  %s651_s19 = scalar_lea.vmem [#allocation6], %s2621_s11 }
  0x60   : > { %2285 = dma.done.wait (%p2530_p9), %s648_s26, 128  }
  0x61   : > { %2287 = vsyncadd (%p2530_p9), %s648_s26, 4294967168  ;;  %s1871_s15 = sshll.u32 %s2322_s2, 4  ;;  %s2917_s7 = sand.u32 1, %s2302_s30   ;;  %v2342_v0 = vmov 0.0   ;;  %vm2343_vm0 = vmmov 0   ;;  %v2663_v1 = vld [vmem:[%s651_s19] sm:$0xff] }
  0x62   : > { %1926 = vmatprep.subr.mxu0 %v2342_v0  ;;  %1937 = vmatprep.subr.mxu1 %v2342_v0  ;;  %s2641_s24 = sshll.u32 %s2917_s7, 3  ;;  %s2644_s25 = sshll.u32 %s2322_s2, 5  ;;  %vm768_vm1 = vcmask 261120  }
  0x63   : > { %1934 = vmatprep.mubr.msk.f32.mxu0 %vm2343_vm0, %v2342_v0  ;;  %1945 = vmatprep.mubr.msk.f32.mxu1 %vm2343_vm0, %v2342_v0  ;;  %s1187_s18 = scalar_lea.vmem %s2902_s16, %s1871_s15  ;;  %p732_p9 = scmp.lt.s32.totalorder %s2326_s23, 1 }
  0x64   : > { %s2959_s6 = sld [smem:[#allocation31_spill]]  ;;  %v2665_v2 = vld [vmem:[%s1187_s18] sm:$0xff]  ;;  %v2667_v3 = vld [vmem:[%s1187_s18 + $0x8] sm:$0xff]  ;;  %p1872_p6 = scmp.ne.s32.totalorder %s2322_s2, 0 }
  0x65   : > { %s2960_s8 = sld [smem:[#allocation33_spill]] }
  0x66   : > { %s733_s20 = scalar_select %p732_p9, %s2326_s23, 1 }
  0x67   : > { %s2961_s27 = sld [smem:[#allocation25_spill]] }
  0x68   : > { %s2669_s15 = sshll.u32 %s733_s20, 3  ;;  %s2962_s10 = sld [smem:[#allocation35_spill]] }
  0x69   : > { %s2963_s21 = sld [smem:[#allocation26_spill]] }
  0x6a   : > { %s755_s17 = scalar_lea.vmem %s2959_s6, %s2644_s25  ;;  %s2964_s22 = sld [smem:[#allocation27_spill]] }
  0x6b   : > { %s842_s7 = scalar_lea.vmem %s2960_s8, %s2644_s25  ;;  %v759_v4 = vld [vmem:[%s755_s17 + $0x18] sm:$0xff]  ;;  %v758_v5 = vld [vmem:[%s755_s17 + $0x10] sm:$0xff]  ;;  %v757_v8 = vld [vmem:[%s755_s17 + $0x8] sm:$0xff]  ;;  %s2971_s18 = sld [smem:[#allocation37_spill]] }
  0x6c   : > { %1927 = vmatpush3.msra.mxu0 %v759_v4  ;;  %v846_v6 = vld [vmem:[%s842_s7 + $0x18] sm:$0xff]  ;;  %v845_v7 = vld [vmem:[%s842_s7 + $0x10] sm:$0xff]  ;;  %v844_v9 = vld [vmem:[%s842_s7 + $0x8] sm:$0xff] }
  0x6d   : > { %1928 = vmatprep.subr.mxu0 %v2342_v0  ;;  %1938 = vmatpush3.msra.mxu1 %v846_v6  ;;  %s735_s14 = scalar_lea.vmem %s2961_s27, %s2669_s15  ;;  %v756_v10 = vld [vmem:[%s755_s17] sm:$0xff]  ;;  %s2965_s17 = sld [smem:[#allocation38_spill]] }
  0x6e   : > { %1929 = vmatpush3.msra.mxu0 %v758_v5  ;;  %1939 = vmatprep.subr.mxu1 %v2342_v0  ;;  %s2681_s20 = scalar_lea.vmem %s2962_s10, %s2644_s25  ;;  %v748_v11 = vld [vmem:[%s735_s14] sm:$0xff]  ;;  %s2696_s14 = scalar_lea.vmem %s2898_s12, %s2644_s25 }
  0x6f   : > { %1930 = vmatprep.subr.mxu0 %v2342_v0  ;;  %1940 = vmatpush3.msra.mxu1 %v845_v7  ;;  %s739_s19 = scalar_lea.vmem %s2963_s21, %s2669_s15  ;;  %v932_v12 = vld [vmem:[%s2681_s20 + $0x18] sm:$0xff]  ;;  %v843_v13 = vld [vmem:[%s842_s7] sm:$0xff]  ;;  %v931_v14 = vld [vmem:[%s2681_s20 + $0x10] sm:$0xff]  ;;  %s2966_s27 = sld [smem:[#allocation28_spill]] }
  0x70   : > { %1931 = vmatpush3.msra.mxu0 %v757_v8  ;;  %1941 = vmatprep.subr.mxu1 %v2342_v0  ;;  %v749_v15 = vld [vmem:[%s739_s19] sm:$0xff]  ;;  %v930_v16 = vld [vmem:[%s2681_s20 + $0x8] sm:$0xff]  ;;  %v1018_v17 = vld [vmem:[%s2696_s14 + $0x18] sm:$0xff]  ;;  %s743_s9 = scalar_lea.vmem %s2964_s22, %s2669_s15  ;;  %s2968_s22 = sld [smem:[#allocation32_spill]] }
  0x71   : > { %1932 = vmatprep.subr.mxu0 %v2342_v0  ;;  %1942 = vmatpush3.msra.mxu1 %v844_v9  ;;  %v929_v18 = vld [vmem:[%s2681_s20] sm:$0xff]  ;;  %v1017_v19 = vld [vmem:[%s2696_s14 + $0x10] sm:$0xff]  ;;  %v1016_v22 = vld [vmem:[%s2696_s14 + $0x8] sm:$0xff]  ;;  %s2972_s21 = sld [smem:[#allocation39_spill]] }
  0x72   : > { %1933 = vmatpush3.msra.mxu0 %v756_v10  ;;  %1943 = vmatprep.subr.mxu1 %v2342_v0  ;;  %v750_v20 = vld [vmem:[%s743_s9] sm:$0xff] }
  0x73   : > { %1935 = vmatmul.mubr.msk.f32.vlgmr.msra.gmra.mxu0 %vm768_vm1, %v748_v11  ;;  %1948 = vmatprep.subr.mxu0 %v2342_v0  ;;  %s1100_s19 = scalar_lea.vmem %s2965_s17, %s2644_s25  ;;  %v1015_v24 = vld [vmem:[%s2696_s14] sm:$0xff]  ;;  %s2969_s17 = sld [smem:[#allocation34_spill]] }
  0x74   : > { %1949 = vmatpush3.msra.mxu0 %v932_v12  ;;  %1944 = vmatpush3.msra.mxu1 %v843_v13  ;;  %v1104_v21 = vld [vmem:[%s1100_s19 + $0x18] sm:$0xff]  ;;  %v1103_v23 = vld [vmem:[%s1100_s19 + $0x10] sm:$0xff]  ;;  %v1102_v25 = vld [vmem:[%s1100_s19 + $0x8] sm:$0xff]  ;;  %s2918_s25 = scalar_lea.vmem [#allocation9], %s2641_s24 }
  0x75   : > { %1950 = vmatprep.subr.mxu0 %v2342_v0  ;;  %1959 = vmatprep.subr.mxu1 %v2342_v0  ;;  %s747_s7 = scalar_lea.vmem %s2966_s27, %s2669_s15  ;;  %v1101_v27 = vld [vmem:[%s1100_s19] sm:$0xff]  ;;  %s2967_s15 = scalar_lea.vmem [#allocation3], %s2621_s11 }
  0x76   : > { %1951 = vmatpush3.msra.mxu0 %v931_v14  ;;  %1946 = vmatmul.mubr.msk.f32.vlgmr.msra.gmra.mxu1 %vm768_vm1, %v749_v15  ;;  %v751_v26 = vld [vmem:[%s747_s7] sm:$0xff]  ;;  %v752_v28 = vld [vmem:[%s2967_s15] sm:$0xff]  ;;  %s760_s9 = scalar_lea.vmem %s2968_s22, %s2322_s2  ;;  %s2970_s27 = sld [smem:[#allocation36_spill]] }
  0x77   : > { %1952 = vmatprep.subr.mxu0 %v2342_v0  ;;  %1956 = vmatprep.mubr.msk.f32.mxu0 %vm2343_vm0, %v2342_v0  ;;  %v1861_v29 = vld [vmem:[%s760_s9] ss:$0 sm:$0xff]  ;;  %s1019_s22 = scalar_lea.vmem %s2971_s18, %s2322_s2 }
  0x78   : > { %1953 = vmatpush3.msra.mxu0 %v930_v16  ;;  %1960 = vmatpush3.msra.mxu1 %v1018_v17  ;;  %v1867_v41 = vld [vmem:[%s1019_s22] ss:$0 sm:$0xff] }
  0x79   : > { %1954 = vmatprep.subr.mxu0 %v2342_v0  ;;  %1961 = vmatprep.subr.mxu1 %v2342_v0  ;;  %s847_s19 = scalar_lea.vmem %s2969_s17, %s2322_s2  ;;  %s1105_s17 = scalar_lea.vmem %s2972_s21, %s2322_s2 }
  0x7a   : > { %1955 = vmatpush3.msra.mxu0 %v929_v18  ;;  %1962 = vmatpush3.msra.mxu1 %v1017_v19  ;;  %v1863_v32 = vld [vmem:[%s847_s19] ss:$0 sm:$0xff]  ;;  %s724_s19 = scalar_lea.vmem [#allocation8], %s2621_s11 }
  0x7b   : > { %1957 = vmatmul.mubr.msk.f32.vlgmr.msra.gmra.mxu0 %vm768_vm1, %v750_v20  ;;  %1970 = vmatprep.subr.mxu0 %v2342_v0  ;;  %v1869_v43 = vld [vmem:[%s1105_s17] ss:$0 sm:$0xff] }
  0x7c   : > { %1971 = vmatpush3.msra.mxu0 %v1104_v21  ;;  %1963 = vmatprep.subr.mxu1 %v2342_v0  ;;  %s933_s7 = scalar_lea.vmem %s2970_s27, %s2322_s2 }
  0x7d   : > { %1972 = vmatprep.subr.mxu0 %v2342_v0  ;;  %1964 = vmatpush3.msra.mxu1 %v1016_v22  ;;  %v1865_v37 = vld [vmem:[%s933_s7] ss:$0 sm:$0xff] }
  0x7e   : > { %1973 = vmatpush3.msra.mxu0 %v1103_v23  ;;  %1965 = vmatprep.subr.mxu1 %v2342_v0 }
  0x7f   : > { %1974 = vmatprep.subr.mxu0 %v2342_v0  ;;  %1966 = vmatpush3.msra.mxu1 %v1015_v24 }
  0x80   : > { %1967 = vmatprep.mubr.msk.f32.mxu1 %vm2343_vm0, %v2342_v0  ;;  %1975 = vmatpush3.msra.mxu0 %v1102_v25 }
  0x81   : > { %1968 = vmatmul.mubr.msk.f32.vlgmr.msra.gmra.mxu1 %vm768_vm1, %v751_v26  ;;  %1976 = vmatprep.subr.mxu0 %v2342_v0 }
  0x82   : > { %1977 = vmatpush3.msra.mxu0 %v1101_v27  ;;  %1978 = vmatprep.mubr.msk.f32.mxu0 %vm2343_vm0, %v2342_v0 }
  0x83   : > { %1979 = vmatmul.mubr.msk.f32.vlgmr.msra.gmra.mxu0 %vm768_vm1, %v752_v28 }
 0x133   : > { %v838_v30 = vpop.f32.mrf.mxu0 }
 0x134   : > { %v839_v31 = vadd.f32 %v1861_v29, %v838_v30 }
 0x135   : > { %v1936_v33 = vpop.f32.mrf.mxu0 }
 0x136   : > { %v924_v34 = vpop.f32.mrf.mxu1 }
 0x137   : > { %v925_v35 = vadd.f32 %v1863_v32, %v924_v34 }
 0x138   : > { %v1947_v36 = vpop.f32.mrf.mxu1 }
 0x13b   : > { %v1010_v38 = vpop.f32.mrf.mxu0 }
 0x13c   : > { %v1011_v39 = vadd.f32 %v1865_v37, %v1010_v38 }
 0x13d   : > { %v1958_v40 = vpop.f32.mrf.mxu0 }
 0x141   : > { %v1096_v42 = vpop.f32.mrf.mxu1  ;;  %1193 = sbr.rel (%p1872_p6) target bundleno = 328 (0x148), region = 104 }
 0x142   : > { %v1097_v44 = vadd.f32 %v1867_v41, %v1096_v42 }
 0x143   : > { %v1969_v45 = vpop.f32.mrf.mxu1  ;;  %v1182_v46 = vpop.f32.mrf.mxu0 }
 0x144   : > { %v1183_v47 = vadd.f32 %v1869_v43, %v1182_v46 }
 0x145   : > { %v1980_v48 = vpop.f32.mrf.mxu0 }
 0x146   : > { %v2344_v49 = vmov 0.0  }
 0x147   : > { %1194 = vst.msk [vmem:[#allocation2] sm:$0xff] %vm768_vm1, %v2344_v49 }
 0x148 PF: > { %1981 = vmatprep.subr.mxu1 %v2342_v0  ;;  %vm1195_vm2 = vcmask 130048   ;;  %1983 = vmatprep.mubr.msk.f32.mxu1 %vm2343_vm0, %v2342_v0  ;;  %s2345_s20 = smov 112   ;;  %vm1430_vm3 = vcmask 64512   ;;  %p1881_p12 = scmp.ne.s32.totalorder %s2322_s2, 1 }
 0x149   : > { %1273 = vrot.lane.b32.xlu0 %v1097_v44, %s2345_s20  ;;  %1982 = vmatpush3.xpose.msk.msra.mxu1 %vm1195_vm2, %v925_v35  ;;  %s2973_s15 = sld [smem:[#allocation40_spill]] (!%p1881_p12) }
 0x14a   : > { %1986 = vmatprep.subr.mxu1 %v2342_v0  ;;  %1991 = vmatprep.subr.mxu0 %v2342_v0 }
 0x14b   : > { %1993 = vmatprep.mubr.msk.f32.mxu0 %vm2343_vm0, %v2342_v0 }
 0x14c   : > { %1984 = vmatmul.mubr.msk.f32.vlgmr.msra.gmra.mxu1 %vm1195_vm2, %v839_v31 }
 0x14d   : > { %1350 = vrot.lane.b32.xlu0 %v1183_v47, %s2345_s20  ;;  %1988 = vmatprep.mubr.msk.f32.mxu1 %vm2343_vm0, %v2342_v0 }
 0x14e   : > { %v1516_v9 = vld [vmem:[#allocation2] sm:$0xff] }
 0x1bb   : > { %v1274_v50 = vpop.permute.xlu0 %1273 }
 0x1bc   : > { %1987 = vmatpush3.xpose.msk.msra.mxu1 %vm1195_vm2, %v1274_v50 }
 0x1bd   : > { %1996 = vmatprep.subr.mxu1 %v2342_v0 }
 0x1bf   : > { %v1351_v51 = vpop.permute.xlu0 %1350  ;;  %1989 = vmatmul.mubr.msk.f32.vlgmr.msra.gmra.mxu1 %vm1195_vm2, %v1097_v44 }
 0x1c0   : > { %1992 = vmatpush3.xpose.msk.msra.mxu0 %vm1195_vm2, %v1351_v51  ;;  %1997 = vmatpush3.msra.mxu1 %v1011_v39 }
 0x1c1   : > { %1998 = vmatprep.mubr.msk.f32.mxu1 %vm2343_vm0, %v2342_v0  ;;  %2001 = vmatprep.subr.mxu0 %v2342_v0 }
 0x1c3   : > { %1994 = vmatmul.mubr.msk.f32.vlgmr.msra.gmra.mxu0 %vm1195_vm2, %v1183_v47 }
 0x1c4   : > { %2002 = vmatpush3.msra.mxu0 %v2667_v3  ;;  %2005 = vmatprep.mubr.msk.f32.mxu0 %vm2343_vm0, %v2342_v0 }
 0x1c5   : > { %2003 = vmatprep.subr.mxu0 %v2342_v0 }
 0x1c6   : > { %2004 = vmatpush3.msra.mxu0 %v2665_v2 }
 0x20c   : > { %v1268_v52 = vpop.f32.mrf.mxu1 }
 0x20d   : > { %1515 = vst.msk [vmem:[%s2918_s25] sm:$0xff] %vm1430_vm3, %v1268_v52  ;;  %v1426_v54 = vmul.f32 0.25, %v1268_v52 }
 0x20e   : > { %v1985_v53 = vpop.f32.mrf.mxu1 }
 0x27f   : > { %v1345_v55 = vpop.f32.mrf.mxu1 }
 0x280   : > { %v1427_v57 = vadd.f32 %v1426_v54, %v1345_v55 }
 0x281   : > { %v1990_v56 = vpop.f32.mrf.mxu1 }
 0x283   : > { %v1422_v58 = vpop.f32.mrf.mxu0 }
 0x284   : > { %v1428_v59 = vadd.f32 %v1427_v57, %v1422_v58 }
 0x285   : > { %v1995_v60 = vpop.f32.mrf.mxu0 }
 0x286   : > { %v1429_v61 = vadd.f32 %v1428_v59, %v2663_v1 }
 0x288   : > { %v1431_v62 = vsel %vm1430_vm3, %v1429_v61, -inf }
 0x289   : > { %1432 = vmax.xlane.f32.xlu1 %v1431_v62 }
 0x312   : > { %v1433_v63 = vpop.xlane.xlu1 %1432 }
 0x313   : > { %v1434_v0 = vsub.f32 %v1429_v61, %v1433_v63 }
 0x315   : > { %v1435_v2 = vmul.f32 1.442695, %v1434_v0 }
 0x317   : > { %2124 = vpow2.f32 %v1435_v2 }
 0x324   : > { %v2125_v3 = vpop.eup %2124 }
 0x325   : > { %v1437_v4 = vsel %vm1430_vm3, %v2125_v3, 0.0 }
 0x326   : > { %1438 = vadd.xlane.f32.xlu1 %v1437_v4 }
 0x3af   : > { %v1439_v5 = vpop.xlane.xlu1 %1438 }
 0x3b0   : > { %2126 = vrcp.f32 %v1439_v5 }
 0x3bd   : > { %v2127_v6 = vpop.eup %2126 }
 0x3be   : > { %v1441_v7 = vmul.f32 %v2127_v6, %v2125_v3 }
 0x3c0   : > { %1999 = vmatmul.mubr.msk.f32.vlgmr.msra.gmra.mxu1 %vm1430_vm3, %v1441_v7 }
 0x480   : > { %v1511_v8 = vpop.f32.mrf.mxu1 }
 0x481   : > { %2006 = vmatmul.mubr.msk.f32.vlgmr.msra.gmra.mxu0 %vm1195_vm2, %v1511_v8 }
 0x482   : > { %v2000_v1 = vpop.f32.mrf.mxu1 }
 0x540   : > { %1595 = sbr.rel (%p1881_p12) target bundleno = 1359 (0x54f), region = 108 }
 0x541   : > { %v1586_v10 = vpop.f32.mrf.mxu0 }
 0x542   : > { %v1590_v11 = vadd.f32 %v1586_v10, %v1516_v9 }
 0x543   : > { %v2007_v12 = vpop.f32.mrf.mxu0 }
 0x544   : > { %1591 = vst.msk [vmem:[#allocation2] sm:$0xff] %vm768_vm1, %v1590_v11 }
 0x545   : > { %v1882_v14 = vld [vmem:[%s2973_s15] ss:$0 sm:$0xff] }
 0x54b   : > { %v1596_v13 = vld [vmem:[#allocation2] sm:$0xff] }
 0x54c   : > { %v1604_v15 = vadd.f32 %v1882_v14, %v1596_v13 }
 0x54e   : > { %1605 = vst.msk [vmem:[%s724_s19] sm:$0xff] %vm768_vm1, %v1604_v15 }
 0x54f PF: > { %s1885_s18 = sshll.u32 %s2326_s23, 7  ;;  %s2975_s26 = sld [smem:[#allocation41_spill]] }
 0x550   : > { %s1625_s17 = sshll.u32 %s724_s19, 4  ;;  %s1607_s20 = scalar_lea.sflag [#allocation5], %s2618_s4  ;;  %s1626_s17 = int_to_ptr.vmem [resolvable:$true] %s1625_s17 }
 0x551   : > { %s2184_s27 = scalar_lea.vmem %s1626_s17, 128  ;;  %s2346_s7 = smov [#allocation8]  }
 0x552   : > { %p2185_p5 = scmp.ne.s32.totalorder %s1626_s17, %s2184_s27  ;;  %s2188_s15 = sshll.u32 %s2346_s7, 4  ;;  %s2189_s15 = int_to_ptr.vmem [resolvable:$false] %s2188_s15 }
 0x553   : > { %s2190_s25 = scalar_lea.vmem %s2189_s15, 256  ;;  %p2191_p4 = scmp.lt.s32.totalorder %s1626_s17, %s2189_s15 }
 0x554   : > { %p2186_p13 = pnand %p2185_p5, %p2536_p10  ;;  %p2192_p0 = scmp.lt.s32.totalorder %s2190_s25, %s2184_s27 }
 0x555   : > { %s1623_s21 = scalar_lea.hbm %s2975_s26, %s1885_s18 }
 0x556   : > { %p2187_p11 = pneg %p2186_p13  ;;  %p2193_p7 = por %p2192_p0, %p2191_p4 }
 0x558   : > { %p2194_p8 = pnand %p2193_p7, %p2187_p11 }
 0x55a   : > { %2197 = shalt.err (!%p2194_p8)
}
 0x55b   : > { %s2198_s22 = scalar_lea.hbm %s1623_s21, 128  ;;  %s2202_s19 = scalar_lea.hbm %s2975_s26, 256 }
 0x55c   : > { %p2199_p1 = scmp.ne.s32.totalorder %s1623_s21, %s2198_s22  ;;  %p2203_p6 = scmp.lt.s32.totalorder %s1623_s21, %s2975_s26 }
 0x55d   : > { %p2204_p12 = scmp.lt.s32.totalorder %s2202_s19, %s2198_s22 }
 0x55e   : > { %p2200_p3 = pnand %p2199_p1, %p2536_p10 }
 0x55f   : > { %p2205_p5 = por %p2204_p12, %p2203_p6 }
 0x560   : > { %p2201_p9 = pneg %p2200_p3 }
 0x562   : > { %p2206_p13 = pnand %p2205_p5, %p2201_p9 }
 0x564   : > { %2209 = shalt.err (!%p2206_p13)
}
 0x565   : > { %2012 = dma.vmem_to_hbm [thread:$0]  (%p2536_p10), %s1626_s17, 128, %s1623_s21, %s1607_s20  }
 0x566   : > { %s1886_s25 = sshll.u32 %s2326_s23, 1  ;;  %s2976_s27 = scalar_lea.vmem [#allocation9], %s2641_s24 }
 0x567   : > { %s1640_s7 = sshll.u32 %s2976_s27, 4  ;;  %s1636_s15 = sadd.s32 %s2322_s2, %s1886_s25  ;;  %s1641_s7 = int_to_ptr.vmem [resolvable:$true] %s1640_s7 }
 0x568   : > { %s1887_s4 = sshll.u32 %s1636_s15, 7  ;;  %s2977_s22 = sld [smem:[#allocation42_spill]] }
 0x569   : > { %s2979_s5 = sand.u32 1, %s2302_s30   ;;  %s2210_s8 = scalar_lea.vmem %s1641_s7, 128 }
 0x56a   : > { %s1612_s6 = scalar_lea.sflag [#allocation10], %s2979_s5  ;;  %p2211_p11 = scmp.ne.s32.totalorder %s1641_s7, %s2210_s8 }
 0x56b   : > { %s2347_s14 = smov [#allocation9]  }
 0x56c   : > { %p2212_p4 = pnand %p2211_p11, %p2563_p2  ;;  %s2214_s10 = sshll.u32 %s2347_s14, 4  ;;  %s2215_s10 = int_to_ptr.vmem [resolvable:$false] %s2214_s10 }
 0x56d   : > { %s2216_s23 = scalar_lea.vmem %s2215_s10, 256  ;;  %p2217_p10 = scmp.lt.s32.totalorder %s1641_s7, %s2215_s10 }
 0x56e   : > { %s2978_s19 = smov %s2977_s22  ;;  %s1638_s9 = scalar_lea.hbm %s2977_s22, %s1887_s4 }
 0x56f   : > { %p2213_p0 = pneg %p2212_p4  ;;  %p2218_p7 = scmp.lt.s32.totalorder %s2216_s23, %s2210_s8 }
 0x571   : > { %p2219_p8 = por %p2218_p7, %p2217_p10 }
 0x573   : > { %p2220_p1 = pnand %p2219_p8, %p2213_p0 }
 0x575   : > { %2223 = shalt.err (!%p2220_p1)
}
 0x576   : > { %s2224_s2 = scalar_lea.hbm %s1638_s9, 128  ;;  %s2228_s21 = scalar_lea.hbm %s2978_s19, 512 }
 0x577   : > { %p2225_p3 = scmp.ne.s32.totalorder %s1638_s9, %s2224_s2  ;;  %p2229_p12 = scmp.lt.s32.totalorder %s1638_s9, %s2978_s19 }
 0x578   : > { %p2230_p5 = scmp.lt.s32.totalorder %s2228_s21, %s2224_s2 }
 0x579   : > { %p2226_p9 = pnand %p2225_p3, %p2563_p2 }
 0x57a   : > { %p2231_p13 = por %p2230_p5, %p2229_p12 }
 0x57b   : > { %p2227_p6 = pneg %p2226_p9 }
 0x57d   : > { %p2232_p11 = pnand %p2231_p13, %p2227_p6 }
 0x57f   : > { %2235 = shalt.err (!%p2232_p11)
}
 0x580   : > { %2013 = dma.vmem_to_hbm [thread:$0]  (%p2563_p2), %s1641_s7, 128, %s1638_s9, %s1612_s6  }
 0x581 PF: > { %s2980_s8 = sld [smem:[#allocation16_spill]]  ;;  %p2031_p4 = scmp.ge.s32.totalorder %s2338_s3, 2 }
 0x582   : > { %p2981_p0 = scmp.ne.s32.totalorder %s2950_s13, 0 }
 0x584   : > { %p2024_p10 = pnand %p2031_p4, %p2981_p0 }
 0x586   : > { %p2025_p7 = pneg %p2024_p10 }
 0x587   : > { %s1652_s10 = sand.u32 1, %s2980_s8  }
 0x588   : > { %s1653_s25 = scalar_lea.sflag [#allocation5], %s1652_s10 }
 0x589   : > { %2289 = dma.done.wait (%p2025_p7), %s1653_s25, 128  }
 0x58a   : > { %2291 = vsyncadd (%p2025_p7), %s1653_s25, 4294967168  ;;  %s1661_s27 = sand.u32 1, %s2298_s0   ;;  %p2982_p8 = scmp.ne.s32.totalorder %s2954_s28, 0 }
 0x58b   : > { %s1662_s29 = scalar_lea.sflag [#allocation10], %s1661_s27 }
 0x58c   : > { %p2027_p1 = pnand %p2031_p4, %p2982_p8 }
 0x58e   : > { %p2028_p3 = pneg %p2027_p1 }
 0x590   : > { %2293 = dma.done.wait (%p2028_p3), %s1662_s29, 128  }
 0x591   : > { %2295 = vsyncadd (%p2028_p3), %s1662_s29, 4294967168  ;;  %s42_s3 = sadd.s32 1, %s2338_s3   ;;  %s2983_s6 = sld [smem:[#allocation15_spill]] }
 0x592   : > { %p39_p2 = scmp.ge.s32.totalorder %s42_s3, 6   ;;  %s2984_s20 = sld [smem:[#allocation24_spill]] }
 0x593   : > { %s2985_s13 = sld [smem:[#allocation17_spill]]  ;;  %s2991_s0 = smov %s2302_s30 }
 0x594   : > { %s2986_s22 = sld [smem:[#allocation23_spill]]  ;;  %s2993_s21 = smov %s2314_s1 }
 0x595   : > { %s2987_s2 = sld [smem:[#allocation18_spill]]  ;;  %41 = sbr.rel (!%p39_p2) target bundleno = 32 (0x20), region = 198 }
 0x596   : > { %s2988_s23 = sld [smem:[#allocation19_spill]] }
 0x597   : > { %s2989_s24 = sld [smem:[#allocation20_spill]]  ;;  %s2992_s30 = smov %s2983_s6 }
 0x598   : > { %s2990_s25 = sld [smem:[#allocation21_spill]] }
 0x599   : > { %s2994_s1 = smov %s2985_s13 }
 0x59a   :  { %1667 = vsyncpa [#allocation4], 1 }
 0x59b   :  { %1669 = vsyncpa [#allocation4 + $0x1], 1 }
 0x59c   :  { %1670 = vsyncpa [#allocation7], 1 }
 0x59d   :  { %1672 = vsyncpa [#allocation7 + $0x1], 1 }
 0x59e   :  { %1673 = vsyncpa [#allocation5], 1 }
 0x59f   :  { %1675 = vsyncpa [#allocation5 + $0x1], 1 }
 0x5a0   :  { %1676 = vsyncpa [#allocation10], 1 }
 0x5a1   :  { %1678 = vsyncpa [#allocation10 + $0x1], 1 }

// kernel: tpu_custom_call.1
= control target key start
LH: loop header
LB: loop body
LE: loop exit
PB: predicated region body
PF: predicated region fallthrough
CT: control target
= control target key end

     0   :  { %s2886_s0 = inlined_call_operand.vmem [shape: f32[2,8,32], index: 0, kind: input, shape index: {}]   ;;  %s2887_s1 = inlined_call_operand.vmem [shape: f32[2,8,32], index: 1, kind: input, shape index: {}]   ;;  %s2888_s2 = inlined_call_operand.vmem [shape: f32[2,8,32], index: 2, kind: input, shape index: {}]   ;;  %s2889_s3 = inlined_call_operand.vmem [shape: f32[2,8,32], index: 3, kind: input, shape index: {}]   ;;  %s2890_s4 = inlined_call_operand.hbm [shape: f32[2,8,32], index: 4, kind: input, shape index: {}]   ;;  %s2891_s5 = inlined_call_operand.hbm [shape: f32[2,1,8,8], index: 5, kind: input, shape index: {}]   ;;  %s2892_s6 = inlined_call_operand.vmem [shape: f32[2,32,16], index: 6, kind: input, shape index: {}]   ;;  %s2893_s7 = inlined_call_operand.vmem [shape: f32[2,1,16], index: 7, kind: input, shape index: {}]   ;;  %s2894_s8 = inlined_call_operand.vmem [shape: f32[2,32,16], index: 8, kind: input, shape index: {}]   ;;  %s2895_s9 = inlined_call_operand.vmem [shape: f32[2,1,16], index: 9, kind: input, shape index: {}]   ;;  %s2896_s10 = inlined_call_operand.vmem [shape: f32[2,32,16], index: 10, kind: input, shape index: {}]   ;;  %s2897_s11 = inlined_call_operand.vmem [shape: f32[2,1,16], index: 11, kind: input, shape index: {}]   ;;  %s2898_s12 = inlined_call_operand.vmem [shape: f32[2,32,32], index: 12, kind: input, shape index: {}]   ;;  %s2899_s13 = inlined_call_operand.vmem [shape: f32[2,1,32], index: 13, kind: input, shape index: {}]   ;;  %s2900_s14 = inlined_call_operand.vmem [shape: f32[2,32,32], index: 14, kind: input, shape index: {}]   ;;  %s2901_s15 = inlined_call_operand.vmem [shape: f32[2,1,32], index: 15, kind: input, shape index: {}]   ;;  %s2902_s16 = inlined_call_operand.vmem [shape: f32[2,16,32], index: 16, kind: input, shape index: {}]   ;;  %s2903_s17 = inlined_call_operand.vmem [shape: f32[1,32], index: 17, kind: input, shape index: {}]   ;;  %s2904_s18 = inlined_call_operand.hbm [shape: f32[2,8,32], index: 18, kind: output, shape index: {0}]   ;;  %s2905_s19 = inlined_call_operand.hbm [shape: f32[2,2,8,8], index: 19, kind: output, shape index: {1}]  }
   0x1   :  { %2919 = sst [smem:[#allocation25_spill]] %s2886_s0 }
   0x2   :  { %2920 = sst [smem:[#allocation26_spill]] %s2887_s1 }
   0x3   :  { %2921 = sst [smem:[#allocation27_spill]] %s2888_s2 }
   0x4   :  { %2922 = sst [smem:[#allocation28_spill]] %s2889_s3 }
   0x5   :  { %2923 = sst [smem:[#allocation29_spill]] %s2890_s4 }
   0x6   :  { %2924 = sst [smem:[#allocation30_spill]] %s2891_s5 }
   0x7   :  { %2925 = sst [smem:[#allocation31_spill]] %s2892_s6 }
   0x8   :  { %2926 = sst [smem:[#allocation32_spill]] %s2893_s7 }
   0x9   :  { %2927 = sst [smem:[#allocation33_spill]] %s2894_s8 }
   0xa   :  { %2928 = sst [smem:[#allocation34_spill]] %s2895_s9 }
   0xb   :  { %2929 = sst [smem:[#allocation35_spill]] %s2896_s10 }
   0xc   :  { %2930 = sst [smem:[#allocation36_spill]] %s2897_s11 }
   0xd   :  { %2931 = sst [smem:[#allocation37_spill]] %s2899_s13 }
   0xe   :  { %2932 = sst [smem:[#allocation38_spill]] %s2900_s14 }
   0xf   :  { %2933 = sst [smem:[#allocation39_spill]] %s2901_s15 }
  0x10   :  { %2934 = sst [smem:[#allocation40_spill]] %s2903_s17 }
  0x11   :  { %2935 = sst [smem:[#allocation41_spill]] %s2904_s18 }
  0x12   :  { %2936 = sst [smem:[#allocation42_spill]] %s2905_s19 }
  0x13   :  { %25 = vsyncpa [#allocation4], 0 }
  0x14   :  { %27 = vsyncpa [#allocation4 + $0x1], 0 }
  0x15   :  { %28 = vsyncpa [#allocation7], 0 }
  0x16   :  { %30 = vsyncpa [#allocation7 + $0x1], 0 }
  0x17   :  { %31 = vsyncpa [#allocation5], 0 }
  0x18   :  { %33 = vsyncpa [#allocation5 + $0x1], 0 }
  0x19   :  { %34 = vsyncpa [#allocation10], 0 }
  0x1a   :  { %36 = vsyncpa [#allocation10 + $0x1], 0  ;;  %s2448_s0 = smov 0   ;;  %s2450_s30 = smov 0  }
  0x1b   :  { %s2452_s20 = smov 0   ;;  %s2454_s21 = smov 0  }
  0x1c   :  { %s2456_s1 = smov 0   ;;  %s2458_s22 = smov 0  }
  0x1d   :  { %s2460_s2 = smov 0   ;;  %s2462_s23 = smov 0  }
  0x1e   :  { %s2464_s24 = smov 0   ;;  %s2466_s25 = smov 0  }
  0x1f   :  { %s2468_s3 = smov 0  }
  0x20 LB: > { %2937 = sst [smem:[#allocation15_spill]] %s2306_s20  ;;  %s1843_s26 = sadd.s32 4294967295, %s2338_s3   ;;  %s2338_s3 = sphi %s2468_s3, %s42_s3   ;;  %s2334_s25 = sphi %s2466_s25, %s2990_s25   ;;  %s2330_s24 = sphi %s2464_s24, %s2989_s24   ;;  %s2326_s23 = sphi %s2462_s23, %s2988_s23   ;;  %s2322_s2 = sphi %s2460_s2, %s2987_s2   ;;  %s2318_s22 = sphi %s2458_s22, %s2986_s22   ;;  %s2314_s1 = sphi %s2456_s1, %s2994_s1   ;;  %s2310_s21 = sphi %s2454_s21, %s2993_s21   ;;  %s2306_s20 = sphi %s2452_s20, %s2984_s20   ;;  %s2302_s30 = sphi %s2450_s30, %s2992_s30   ;;  %s2298_s0 = sphi %s2448_s0, %s2991_s0  }
  0x21   : > { %2938 = sst [smem:[#allocation16_spill]] %s2310_s21  ;;  %s1844_s27 = sadd.s32 4294967294, %s2338_s3  }
  0x22   : > { %2939 = sst [smem:[#allocation17_spill]] %s2318_s22  ;;  %s51_s28 = sadd.s32 1, %s2330_s24 }
  0x23   : > { %2940 = sst [smem:[#allocation18_spill]] %s2330_s24  ;;  %s54_s29 = sadd.s32 1, %s2334_s25 }
  0x24   : > { %2941 = sst [smem:[#allocation19_spill]] %s2334_s25  ;;  %p52_p0 = scmp.ge.s32.totalorder %s51_s28, 2 }
  0x25   : > { %s165_s19 = sadd.s32 1, %s2318_s22  ;;  %p172_p1 = scmp.ne.s32.totalorder %s2318_s22, %s2314_s1 }
  0x26   : > { %p173_p2 = scmp.eq.s32.totalorder %s2338_s3, 0  ;;  %s2996_s28 = smov (%p52_p0, %s51_s28), 0 }
  0x27   : > { %2942 = sst [smem:[#allocation20_spill]] %s2996_s28  ;;  %s2998_s29 = smov (!%p52_p0, %s54_s29), %s2334_s25 }
  0x28   : > { %p2514_p3 = por %p173_p2, %p172_p1  ;;  %p178_p4 = scmp.ne.s32.totalorder %s2314_s1, %s2310_s21 }
  0x29   : > { %p56_p5 = scmp.ge.s32.totalorder %s2998_s29, 2  ;;  %p179_p6 = scmp.eq.s32.totalorder %s1843_s26, 0 }
  0x2a   : > { %p2520_p7 = scmp.eq.s32.totalorder %s1843_s26, 3  ;;  %p2524_p8 = scmp.eq.s32.totalorder %s1844_s27, 3 }
  0x2b   : > { %s3000_s29 = smov (%p56_p5, %s2998_s29), 0  ;;  %p2530_p9 = por %p179_p6, %p178_p4 }
  0x2c   : > { %2946 = sst [smem:[#allocation21_spill]] %s3000_s29  ;;  %p2536_p10 = por %p2520_p7, %p172_p1 }
  0x2d   : > { %s162_s27 = ssub.s32 %s2334_s25, %s3000_s29  ;;  %p2544_p11 = por %p2524_p8, %p178_p4 }
  0x2e   : > { %s2948_s26 = scalar_select %p2536_p10, 1, 0 }
  0x2f   : > { %s2950_s13 = scalar_select %p2544_p11, 1, 0 }
  0x30   : > { %2949 = sst [smem:[#allocation22_spill]] %s2948_s26  ;;  %p163_p12 = scmp.eq.s32.totalorder %s162_s27, 0 }
  0x31   : > { %s493_s11 = ssub.s32 %s2330_s24, %s2996_s28  ;;  %s497_s7 = sadd.s32 1, %s2306_s20 }
  0x32   : > { %s494_s9 = sor.u32 %s493_s11, %s162_s27  ;;  %p507_p0 = scmp.ne.s32.totalorder %s2306_s20, %s2302_s30 }
  0x33   : > { %s2552_s14 = scalar_select %p163_p12, %s2318_s22, %s165_s19  }
  0x34   : > { %p495_p13 = scmp.eq.s32.totalorder %s494_s9, 0  ;;  %p513_p1 = scmp.ne.s32.totalorder %s2302_s30, %s2298_s0 }
  0x35   : > { %2951 = sst [smem:[#allocation23_spill]] %s2552_s14  ;;  %p2563_p2 = por %p507_p0, %p2520_p7 }
  0x36   : > { %s2559_s26 = scalar_select %p495_p13, %s2306_s20, %s497_s7  }
  0x37   : > { %p2569_p4 = por %p513_p1, %p2524_p8  ;;  %p2030_p5 = scmp.lt.s32.totalorder %s2338_s3, 4 }
  0x38   : > { %2952 = sst [smem:[#allocation24_spill]] %s2559_s26  ;;  %s2575_s11 = sand.u32 1, %s2318_s22  }
  0x39   : > { %s2954_s28 = scalar_select %p2569_p4, 1, 0 }
  0x3a   : > { %s1847_s9 = sshll.u32 %s2575_s11, 3  ;;  %s1848_s19 = sshll.u32 %s2334_s25, 7 }
  0x3b   : > { %s2955_s4 = sld [smem:[#allocation29_spill]]  ;;  %s602_s24 = scalar_lea.vmem [#allocation3], %s1847_s9 }
  0x3c   : > { %s609_s14 = sshll.u32 %s602_s24, 4  ;;  %p2584_p6 = pnand %p2030_p5, %p2514_p3  ;;  %s610_s14 = int_to_ptr.vmem [resolvable:$true] %s609_s14 }
  0x3d   : > { %p1851_p7 = scmp.ge.s32.totalorder %s2338_s3, 1  ;;  %p632_p8 = scmp.lt.s32.totalorder %s2338_s3, 5 }
  0x3e   : > { %s599_s22 = scalar_lea.sflag [#allocation4], %s2575_s11  ;;  %p2130_p12 = pneg %p2584_p6 }
  0x3f   : > { %s2141_s25 = scalar_lea.vmem %s610_s14, 128  ;;  %s2340_s24 = smov [#allocation3]  }
  0x40   : > { %p2142_p13 = scmp.ne.s32.totalorder %s610_s14, %s2141_s25  ;;  %s2146_s27 = sshll.u32 %s2340_s24, 4  ;;  %s2147_s27 = int_to_ptr.vmem [resolvable:$false] %s2146_s27 }
  0x41   : > { %s607_s17 = scalar_lea.hbm %s2955_s4, %s1848_s19  ;;  %s2148_s18 = scalar_lea.vmem %s2147_s27, 256 }
  0x42   : > { %p2144_p0 = pnand %p2142_p13, %p2130_p12  ;;  %p2149_p3 = scmp.lt.s32.totalorder %s610_s14, %s2147_s27 }
  0x43   : > { %p2150_p5 = scmp.lt.s32.totalorder %s2148_s18, %s2141_s25 }
  0x44   : > { %p2145_p1 = pneg %p2144_p0 }
  0x45   : > { %p2151_p4 = por %p2150_p5, %p2149_p3 }
  0x47   : > { %p2152_p11 = pnand %p2151_p4, %p2145_p1 }
  0x49   : > { %2155 = shalt.err (!%p2152_p11)
}
  0x4a   : > { %2019 = dma.hbm_to_vmem [thread:$0]  (!%p2584_p6), %s607_s17, 128, %s610_s14, %s599_s22  }
  0x4b   : > { %p2602_p13 = pnand %p1851_p7, %p632_p8  ;;  %s2958_s5 = sld [smem:[#allocation30_spill]] }
  0x4c   : > { %s620_s27 = scalar_lea.vmem [#allocation6], %s1847_s9  ;;  %s617_s26 = scalar_lea.sflag [#allocation7], %s2575_s11 }
  0x4d   : > { %s627_s18 = sshll.u32 %s620_s27, 4  ;;  %s2341_s14 = smov [#allocation6]   ;;  %s628_s18 = int_to_ptr.vmem [resolvable:$true] %s627_s18 }
  0x4e   : > { %s2169_s20 = scalar_lea.vmem %s628_s18, 128  ;;  %s2174_s22 = sshll.u32 %s2341_s14, 4  ;;  %s2175_s22 = int_to_ptr.vmem [resolvable:$false] %s2174_s22 }
  0x4f   : > { %p2170_p11 = scmp.ne.s32.totalorder %s628_s18, %s2169_s20  ;;  %s2176_s17 = scalar_lea.vmem %s2175_s22, 256 }
  0x50   : > { %p2177_p7 = scmp.lt.s32.totalorder %s628_s18, %s2175_s22  ;;  %p2178_p8 = scmp.lt.s32.totalorder %s2176_s17, %s2169_s20 }
  0x51   : > { %s625_s25 = scalar_lea.hbm %s2958_s5, %s1848_s19  ;;  %p2172_p4 = pnand %p2170_p11, %p2130_p12 }
  0x52   : > { %p2179_p1 = por %p2178_p8, %p2177_p7 }
  0x53   : > { %p2173_p0 = pneg %p2172_p4 }
  0x55   : > { %p2180_p3 = pnand %p2179_p1, %p2173_p0 }
  0x57   : > { %2183 = shalt.err (!%p2180_p3)
}
  0x58   : > { %2022 = dma.hbm_to_vmem [thread:$0]  (!%p2584_p6), %s625_s25, 128, %s628_s18, %s617_s26  }
  0x59   : > { %636 = sbr.rel (%p2602_p13) target bundleno = 1409 (0x581), region = 92  ;;  %s2618_s4 = sand.u32 (!%p2602_p13), 1, %s2314_s1  }
  0x5a   : > { %s2621_s11 = sshll.u32 (!%p2602_p13), %s2618_s4, 3  ;;  %s639_s9 = scalar_lea.sflag (!%p2602_p13), [#allocation4], %s2618_s4 }
  0x5e   : > { %2281 = dma.done.wait (%p2530_p9), %s639_s9, 128  }
  0x5f   : > { %2283 = vsyncadd (%p2530_p9), %s639_s9, 4294967168  ;;  %s648_s26 = scalar_lea.sflag [#allocation7], %s2618_s4  ;;  %s651_s19 = scalar_lea.vmem [#allocation6], %s2621_s11 }
  0x60   : > { %2285 = dma.done.wait (%p2530_p9), %s648_s26, 128  }
  0x61   : > { %2287 = vsyncadd (%p2530_p9), %s648_s26, 4294967168  ;;  %s1871_s15 = sshll.u32 %s2322_s2, 4  ;;  %s2917_s7 = sand.u32 1, %s2302_s30   ;;  %v2342_v0 = vmov 0.0   ;;  %vm2343_vm0 = vmmov 0   ;;  %v2663_v1 = vld [vmem:[%s651_s19] sm:$0xff] }
  0x62   : > { %1926 = vmatprep.subr.mxu0 %v2342_v0  ;;  %1937 = vmatprep.subr.mxu1 %v2342_v0  ;;  %s2641_s24 = sshll.u32 %s2917_s7, 3  ;;  %s2644_s25 = sshll.u32 %s2322_s2, 5  ;;  %vm768_vm1 = vcmask 261120  }
  0x63   : > { %1934 = vmatprep.mubr.msk.f32.mxu0 %vm2343_vm0, %v2342_v0  ;;  %1945 = vmatprep.mubr.msk.f32.mxu1 %vm2343_vm0, %v2342_v0  ;;  %s1187_s18 = scalar_lea.vmem %s2902_s16, %s1871_s15  ;;  %p732_p9 = scmp.lt.s32.totalorder %s2326_s23, 1 }
  0x64   : > { %s2959_s6 = sld [smem:[#allocation31_spill]]  ;;  %v2665_v2 = vld [vmem:[%s1187_s18] sm:$0xff]  ;;  %v2667_v3 = vld [vmem:[%s1187_s18 + $0x8] sm:$0xff]  ;;  %p1872_p6 = scmp.ne.s32.totalorder %s2322_s2, 0 }
  0x65   : > { %s2960_s8 = sld [smem:[#allocation33_spill]] }
  0x66   : > { %s733_s20 = scalar_select %p732_p9, %s2326_s23, 1 }
  0x67   : > { %s2961_s27 = sld [smem:[#allocation25_spill]] }
  0x68   : > { %s2669_s15 = sshll.u32 %s733_s20, 3  ;;  %s2962_s10 = sld [smem:[#allocation35_spill]] }
  0x69   : > { %s2963_s21 = sld [smem:[#allocation26_spill]] }
  0x6a   : > { %s755_s17 = scalar_lea.vmem %s2959_s6, %s2644_s25  ;;  %s2964_s22 = sld [smem:[#allocation27_spill]] }
  0x6b   : > { %s842_s7 = scalar_lea.vmem %s2960_s8, %s2644_s25  ;;  %v759_v4 = vld [vmem:[%s755_s17 + $0x18] sm:$0xff]  ;;  %v758_v5 = vld [vmem:[%s755_s17 + $0x10] sm:$0xff]  ;;  %v757_v8 = vld [vmem:[%s755_s17 + $0x8] sm:$0xff]  ;;  %s2971_s18 = sld [smem:[#allocation37_spill]] }
  0x6c   : > { %1927 = vmatpush3.msra.mxu0 %v759_v4  ;;  %v846_v6 = vld [vmem:[%s842_s7 + $0x18] sm:$0xff]  ;;  %v845_v7 = vld [vmem:[%s842_s7 + $0x10] sm:$0xff]  ;;  %v844_v9 = vld [vmem:[%s842_s7 + $0x8] sm:$0xff] }
  0x6d   : > { %1928 = vmatprep.subr.mxu0 %v2342_v0  ;;  %1938 = vmatpush3.msra.mxu1 %v846_v6  ;;  %s735_s14 = scalar_lea.vmem %s2961_s27, %s2669_s15  ;;  %v756_v10 = vld [vmem:[%s755_s17] sm:$0xff]  ;;  %s2965_s17 = sld [smem:[#allocation38_spill]] }
  0x6e   : > { %1929 = vmatpush3.msra.mxu0 %v758_v5  ;;  %1939 = vmatprep.subr.mxu1 %v2342_v0  ;;  %s2681_s20 = scalar_lea.vmem %s2962_s10, %s2644_s25  ;;  %v748_v11 = vld [vmem:[%s735_s14] sm:$0xff]  ;;  %s2696_s14 = scalar_lea.vmem %s2898_s12, %s2644_s25 }
  0x6f   : > { %1930 = vmatprep.subr.mxu0 %v2342_v0  ;;  %1940 = vmatpush3.msra.mxu1 %v845_v7  ;;  %s739_s19 = scalar_lea.vmem %s2963_s21, %s2669_s15  ;;  %v932_v12 = vld [vmem:[%s2681_s20 + $0x18] sm:$0xff]  ;;  %v843_v13 = vld [vmem:[%s842_s7] sm:$0xff]  ;;  %v931_v14 = vld [vmem:[%s2681_s20 + $0x10] sm:$0xff]  ;;  %s2966_s27 = sld [smem:[#allocation28_spill]] }
  0x70   : > { %1931 = vmatpush3.msra.mxu0 %v757_v8  ;;  %1941 = vmatprep.subr.mxu1 %v2342_v0  ;;  %v749_v15 = vld [vmem:[%s739_s19] sm:$0xff]  ;;  %v930_v16 = vld [vmem:[%s2681_s20 + $0x8] sm:$0xff]  ;;  %v1018_v17 = vld [vmem:[%s2696_s14 + $0x18] sm:$0xff]  ;;  %s743_s9 = scalar_lea.vmem %s2964_s22, %s2669_s15  ;;  %s2968_s22 = sld [smem:[#allocation32_spill]] }
  0x71   : > { %1932 = vmatprep.subr.mxu0 %v2342_v0  ;;  %1942 = vmatpush3.msra.mxu1 %v844_v9  ;;  %v929_v18 = vld [vmem:[%s2681_s20] sm:$0xff]  ;;  %v1017_v19 = vld [vmem:[%s2696_s14 + $0x10] sm:$0xff]  ;;  %v1016_v22 = vld [vmem:[%s2696_s14 + $0x8] sm:$0xff]  ;;  %s2972_s21 = sld [smem:[#allocation39_spill]] }
  0x72   : > { %1933 = vmatpush3.msra.mxu0 %v756_v10  ;;  %1943 = vmatprep.subr.mxu1 %v2342_v0  ;;  %v750_v20 = vld [vmem:[%s743_s9] sm:$0xff] }
  0x73   : > { %1935 = vmatmul.mubr.msk.f32.vlgmr.msra.gmra.mxu0 %vm768_vm1, %v748_v11  ;;  %1948 = vmatprep.subr.mxu0 %v2342_v0  ;;  %s1100_s19 = scalar_lea.vmem %s2965_s17, %s2644_s25  ;;  %v1015_v24 = vld [vmem:[%s2696_s14] sm:$0xff]  ;;  %s2969_s17 = sld [smem:[#allocation34_spill]] }
  0x74   : > { %1949 = vmatpush3.msra.mxu0 %v932_v12  ;;  %1944 = vmatpush3.msra.mxu1 %v843_v13  ;;  %v1104_v21 = vld [vmem:[%s1100_s19 + $0x18] sm:$0xff]  ;;  %v1103_v23 = vld [vmem:[%s1100_s19 + $0x10] sm:$0xff]  ;;  %v1102_v25 = vld [vmem:[%s1100_s19 + $0x8] sm:$0xff]  ;;  %s2918_s25 = scalar_lea.vmem [#allocation9], %s2641_s24 }
  0x75   : > { %1950 = vmatprep.subr.mxu0 %v2342_v0  ;;  %1959 = vmatprep.subr.mxu1 %v2342_v0  ;;  %s747_s7 = scalar_lea.vmem %s2966_s27, %s2669_s15  ;;  %v1101_v27 = vld [vmem:[%s1100_s19] sm:$0xff]  ;;  %s2967_s15 = scalar_lea.vmem [#allocation3], %s2621_s11 }
  0x76   : > { %1951 = vmatpush3.msra.mxu0 %v931_v14  ;;  %1946 = vmatmul.mubr.msk.f32.vlgmr.msra.gmra.mxu1 %vm768_vm1, %v749_v15  ;;  %v751_v26 = vld [vmem:[%s747_s7] sm:$0xff]  ;;  %v752_v28 = vld [vmem:[%s2967_s15] sm:$0xff]  ;;  %s760_s9 = scalar_lea.vmem %s2968_s22, %s2322_s2  ;;  %s2970_s27 = sld [smem:[#allocation36_spill]] }
  0x77   : > { %1952 = vmatprep.subr.mxu0 %v2342_v0  ;;  %1956 = vmatprep.mubr.msk.f32.mxu0 %vm2343_vm0, %v2342_v0  ;;  %v1861_v29 = vld [vmem:[%s760_s9] ss:$0 sm:$0xff]  ;;  %s1019_s22 = scalar_lea.vmem %s2971_s18, %s2322_s2 }
  0x78   : > { %1953 = vmatpush3.msra.mxu0 %v930_v16  ;;  %1960 = vmatpush3.msra.mxu1 %v1018_v17  ;;  %v1867_v41 = vld [vmem:[%s1019_s22] ss:$0 sm:$0xff] }
  0x79   : > { %1954 = vmatprep.subr.mxu0 %v2342_v0  ;;  %1961 = vmatprep.subr.mxu1 %v2342_v0  ;;  %s847_s19 = scalar_lea.vmem %s2969_s17, %s2322_s2  ;;  %s1105_s17 = scalar_lea.vmem %s2972_s21, %s2322_s2 }
  0x7a   : > { %1955 = vmatpush3.msra.mxu0 %v929_v18  ;;  %1962 = vmatpush3.msra.mxu1 %v1017_v19  ;;  %v1863_v32 = vld [vmem:[%s847_s19] ss:$0 sm:$0xff]  ;;  %s724_s19 = scalar_lea.vmem [#allocation8], %s2621_s11 }
  0x7b   : > { %1957 = vmatmul.mubr.msk.f32.vlgmr.msra.gmra.mxu0 %vm768_vm1, %v750_v20  ;;  %1970 = vmatprep.subr.mxu0 %v2342_v0  ;;  %v1869_v43 = vld [vmem:[%s1105_s17] ss:$0 sm:$0xff] }
  0x7c   : > { %1971 = vmatpush3.msra.mxu0 %v1104_v21  ;;  %1963 = vmatprep.subr.mxu1 %v2342_v0  ;;  %s933_s7 = scalar_lea.vmem %s2970_s27, %s2322_s2 }
  0x7d   : > { %1972 = vmatprep.subr.mxu0 %v2342_v0  ;;  %1964 = vmatpush3.msra.mxu1 %v1016_v22  ;;  %v1865_v37 = vld [vmem:[%s933_s7] ss:$0 sm:$0xff] }
  0x7e   : > { %1973 = vmatpush3.msra.mxu0 %v1103_v23  ;;  %1965 = vmatprep.subr.mxu1 %v2342_v0 }
  0x7f   : > { %1974 = vmatprep.subr.mxu0 %v2342_v0  ;;  %1966 = vmatpush3.msra.mxu1 %v1015_v24 }
  0x80   : > { %1967 = vmatprep.mubr.msk.f32.mxu1 %vm2343_vm0, %v2342_v0  ;;  %1975 = vmatpush3.msra.mxu0 %v1102_v25 }
  0x81   : > { %1968 = vmatmul.mubr.msk.f32.vlgmr.msra.gmra.mxu1 %vm768_vm1, %v751_v26  ;;  %1976 = vmatprep.subr.mxu0 %v2342_v0 }
  0x82   : > { %1977 = vmatpush3.msra.mxu0 %v1101_v27  ;;  %1978 = vmatprep.mubr.msk.f32.mxu0 %vm2343_vm0, %v2342_v0 }
  0x83   : > { %1979 = vmatmul.mubr.msk.f32.vlgmr.msra.gmra.mxu0 %vm768_vm1, %v752_v28 }
 0x133   : > { %v838_v30 = vpop.f32.mrf.mxu0 }
 0x134   : > { %v839_v31 = vadd.f32 %v1861_v29, %v838_v30 }
 0x135   : > { %v1936_v33 = vpop.f32.mrf.mxu0 }
 0x136   : > { %v924_v34 = vpop.f32.mrf.mxu1 }
 0x137   : > { %v925_v35 = vadd.f32 %v1863_v32, %v924_v34 }
 0x138   : > { %v1947_v36 = vpop.f32.mrf.mxu1 }
 0x13b   : > { %v1010_v38 = vpop.f32.mrf.mxu0 }
 0x13c   : > { %v1011_v39 = vadd.f32 %v1865_v37, %v1010_v38 }
 0x13d   : > { %v1958_v40 = vpop.f32.mrf.mxu0 }
 0x141   : > { %v1096_v42 = vpop.f32.mrf.mxu1  ;;  %1193 = sbr.rel (%p1872_p6) target bundleno = 328 (0x148), region = 104 }
 0x142   : > { %v1097_v44 = vadd.f32 %v1867_v41, %v1096_v42 }
 0x143   : > { %v1969_v45 = vpop.f32.mrf.mxu1  ;;  %v1182_v46 = vpop.f32.mrf.mxu0 }
 0x144   : > { %v1183_v47 = vadd.f32 %v1869_v43, %v1182_v46 }
 0x145   : > { %v1980_v48 = vpop.f32.mrf.mxu0 }
 0x146   : > { %v2344_v49 = vmov 0.0  }
 0x147   : > { %1194 = vst.msk [vmem:[#allocation2] sm:$0xff] %vm768_vm1, %v2344_v49 }
 0x148 PF: > { %1981 = vmatprep.subr.mxu1 %v2342_v0  ;;  %vm1195_vm2 = vcmask 130048   ;;  %1983 = vmatprep.mubr.msk.f32.mxu1 %vm2343_vm0, %v2342_v0  ;;  %s2345_s20 = smov 112   ;;  %vm1430_vm3 = vcmask 64512   ;;  %p1881_p12 = scmp.ne.s32.totalorder %s2322_s2, 1 }
 0x149   : > { %1273 = vrot.lane.b32.xlu0 %v1097_v44, %s2345_s20  ;;  %1982 = vmatpush3.xpose.msk.msra.mxu1 %vm1195_vm2, %v925_v35  ;;  %s2973_s15 = sld [smem:[#allocation40_spill]] (!%p1881_p12) }
 0x14a   : > { %1986 = vmatprep.subr.mxu1 %v2342_v0  ;;  %1991 = vmatprep.subr.mxu0 %v2342_v0 }
 0x14b   : > { %1993 = vmatprep.mubr.msk.f32.mxu0 %vm2343_vm0, %v2342_v0 }
 0x14c   : > { %1984 = vmatmul.mubr.msk.f32.vlgmr.msra.gmra.mxu1 %vm1195_vm2, %v839_v31 }
 0x14d   : > { %1350 = vrot.lane.b32.xlu0 %v1183_v47, %s2345_s20  ;;  %1988 = vmatprep.mubr.msk.f32.mxu1 %vm2343_vm0, %v2342_v0 }
 0x14e   : > { %v1516_v9 = vld [vmem:[#allocation2] sm:$0xff] }
 0x1bb   : > { %v1274_v50 = vpop.permute.xlu0 %1273 }
 0x1bc   : > { %1987 = vmatpush3.xpose.msk.msra.mxu1 %vm1195_vm2, %v1274_v50 }
 0x1bd   : > { %1996 = vmatprep.subr.mxu1 %v2342_v0 }
 0x1bf   : > { %v1351_v51 = vpop.permute.xlu0 %1350  ;;  %1989 = vmatmul.mubr.msk.f32.vlgmr.msra.gmra.mxu1 %vm1195_vm2, %v1097_v44 }
 0x1c0   : > { %1992 = vmatpush3.xpose.msk.msra.mxu0 %vm1195_vm2, %v1351_v51  ;;  %1997 = vmatpush3.msra.mxu1 %v1011_v39 }
 0x1c1   : > { %1998 = vmatprep.mubr.msk.f32.mxu1 %vm2343_vm0, %v2342_v0  ;;  %2001 = vmatprep.subr.mxu0 %v2342_v0 }
 0x1c3   : > { %1994 = vmatmul.mubr.msk.f32.vlgmr.msra.gmra.mxu0 %vm1195_vm2, %v1183_v47 }
 0x1c4   : > { %2002 = vmatpush3.msra.mxu0 %v2667_v3  ;;  %2005 = vmatprep.mubr.msk.f32.mxu0 %vm2343_vm0, %v2342_v0 }
 0x1c5   : > { %2003 = vmatprep.subr.mxu0 %v2342_v0 }
 0x1c6   : > { %2004 = vmatpush3.msra.mxu0 %v2665_v2 }
 0x20c   : > { %v1268_v52 = vpop.f32.mrf.mxu1 }
 0x20d   : > { %1515 = vst.msk [vmem:[%s2918_s25] sm:$0xff] %vm1430_vm3, %v1268_v52  ;;  %v1426_v54 = vmul.f32 0.25, %v1268_v52 }
 0x20e   : > { %v1985_v53 = vpop.f32.mrf.mxu1 }
 0x27f   : > { %v1345_v55 = vpop.f32.mrf.mxu1 }
 0x280   : > { %v1427_v57 = vadd.f32 %v1426_v54, %v1345_v55 }
 0x281   : > { %v1990_v56 = vpop.f32.mrf.mxu1 }
 0x283   : > { %v1422_v58 = vpop.f32.mrf.mxu0 }
 0x284   : > { %v1428_v59 = vadd.f32 %v1427_v57, %v1422_v58 }
 0x285   : > { %v1995_v60 = vpop.f32.mrf.mxu0 }
 0x286   : > { %v1429_v61 = vadd.f32 %v1428_v59, %v2663_v1 }
 0x288   : > { %v1431_v62 = vsel %vm1430_vm3, %v1429_v61, -inf }
 0x289   : > { %1432 = vmax.xlane.f32.xlu1 %v1431_v62 }
 0x312   : > { %v1433_v63 = vpop.xlane.xlu1 %1432 }
 0x313   : > { %v1434_v0 = vsub.f32 %v1429_v61, %v1433_v63 }
 0x315   : > { %v1435_v2 = vmul.f32 1.442695, %v1434_v0 }
 0x317   : > { %2124 = vpow2.f32 %v1435_v2 }
 0x324   : > { %v2125_v3 = vpop.eup %2124 }
 0x325   : > { %v1437_v4 = vsel %vm1430_vm3, %v2125_v3, 0.0 }
 0x326   : > { %1438 = vadd.xlane.f32.xlu1 %v1437_v4 }
 0x3af   : > { %v1439_v5 = vpop.xlane.xlu1 %1438 }
 0x3b0   : > { %2126 = vrcp.f32 %v1439_v5 }
 0x3bd   : > { %v2127_v6 = vpop.eup %2126 }
 0x3be   : > { %v1441_v7 = vmul.f32 %v2127_v6, %v2125_v3 }
 0x3c0   : > { %1999 = vmatmul.mubr.msk.f32.vlgmr.msra.gmra.mxu1 %vm1430_vm3, %v1441_v7 }
 0x480   : > { %v1511_v8 = vpop.f32.mrf.mxu1 }
 0x481   : > { %2006 = vmatmul.mubr.msk.f32.vlgmr.msra.gmra.mxu0 %vm1195_vm2, %v1511_v8 }
 0x482   : > { %v2000_v1 = vpop.f32.mrf.mxu1 }
 0x540   : > { %1595 = sbr.rel (%p1881_p12) target bundleno = 1359 (0x54f), region = 108 }
 0x541   : > { %v1586_v10 = vpop.f32.mrf.mxu0 }
 0x542   : > { %v1590_v11 = vadd.f32 %v1586_v10, %v1516_v9 }
 0x543   : > { %v2007_v12 = vpop.f32.mrf.mxu0 }
 0x544   : > { %1591 = vst.msk [vmem:[#allocation2] sm:$0xff] %vm768_vm1, %v1590_v11 }
 0x545   : > { %v1882_v14 = vld [vmem:[%s2973_s15] ss:$0 sm:$0xff] }
 0x54b   : > { %v1596_v13 = vld [vmem:[#allocation2] sm:$0xff] }
 0x54c   : > { %v1604_v15 = vadd.f32 %v1882_v14, %v1596_v13 }
 0x54e   : > { %1605 = vst.msk [vmem:[%s724_s19] sm:$0xff] %vm768_vm1, %v1604_v15 }
 0x54f PF: > { %s1885_s18 = sshll.u32 %s2326_s23, 7  ;;  %s2975_s26 = sld [smem:[#allocation41_spill]] }
 0x550   : > { %s1625_s17 = sshll.u32 %s724_s19, 4  ;;  %s1607_s20 = scalar_lea.sflag [#allocation5], %s2618_s4  ;;  %s1626_s17 = int_to_ptr.vmem [resolvable:$true] %s1625_s17 }
 0x551   : > { %s2184_s27 = scalar_lea.vmem %s1626_s17, 128  ;;  %s2346_s7 = smov [#allocation8]  }
 0x552   : > { %p2185_p5 = scmp.ne.s32.totalorder %s1626_s17, %s2184_s27  ;;  %s2188_s15 = sshll.u32 %s2346_s7, 4  ;;  %s2189_s15 = int_to_ptr.vmem [resolvable:$false] %s2188_s15 }
 0x553   : > { %s2190_s25 = scalar_lea.vmem %s2189_s15, 256  ;;  %p2191_p4 = scmp.lt.s32.totalorder %s1626_s17, %s2189_s15 }
 0x554   : > { %p2186_p13 = pnand %p2185_p5, %p2536_p10  ;;  %p2192_p0 = scmp.lt.s32.totalorder %s2190_s25, %s2184_s27 }
 0x555   : > { %s1623_s21 = scalar_lea.hbm %s2975_s26, %s1885_s18 }
 0x556   : > { %p2187_p11 = pneg %p2186_p13  ;;  %p2193_p7 = por %p2192_p0, %p2191_p4 }
 0x558   : > { %p2194_p8 = pnand %p2193_p7, %p2187_p11 }
 0x55a   : > { %2197 = shalt.err (!%p2194_p8)
}
 0x55b   : > { %s2198_s22 = scalar_lea.hbm %s1623_s21, 128  ;;  %s2202_s19 = scalar_lea.hbm %s2975_s26, 256 }
 0x55c   : > { %p2199_p1 = scmp.ne.s32.totalorder %s1623_s21, %s2198_s22  ;;  %p2203_p6 = scmp.lt.s32.totalorder %s1623_s21, %s2975_s26 }
 0x55d   : > { %p2204_p12 = scmp.lt.s32.totalorder %s2202_s19, %s2198_s22 }
 0x55e   : > { %p2200_p3 = pnand %p2199_p1, %p2536_p10 }
 0x55f   : > { %p2205_p5 = por %p2204_p12, %p2203_p6 }
 0x560   : > { %p2201_p9 = pneg %p2200_p3 }
 0x562   : > { %p2206_p13 = pnand %p2205_p5, %p2201_p9 }
 0x564   : > { %2209 = shalt.err (!%p2206_p13)
}
 0x565   : > { %2012 = dma.vmem_to_hbm [thread:$0]  (%p2536_p10), %s1626_s17, 128, %s1623_s21, %s1607_s20  }
 0x566   : > { %s1886_s25 = sshll.u32 %s2326_s23, 1  ;;  %s2976_s27 = scalar_lea.vmem [#allocation9], %s2641_s24 }
 0x567   : > { %s1640_s7 = sshll.u32 %s2976_s27, 4  ;;  %s1636_s15 = sadd.s32 %s2322_s2, %s1886_s25  ;;  %s1641_s7 = int_to_ptr.vmem [resolvable:$true] %s1640_s7 }
 0x568   : > { %s1887_s4 = sshll.u32 %s1636_s15, 7  ;;  %s2977_s22 = sld [smem:[#allocation42_spill]] }
 0x569   : > { %s2979_s5 = sand.u32 1, %s2302_s30   ;;  %s2210_s8 = scalar_lea.vmem %s1641_s7, 128 }
 0x56a   : > { %s1612_s6 = scalar_lea.sflag [#allocation10], %s2979_s5  ;;  %p2211_p11 = scmp.ne.s32.totalorder %s1641_s7, %s2210_s8 }
 0x56b   : > { %s2347_s14 = smov [#allocation9]  }
 0x56c   : > { %p2212_p4 = pnand %p2211_p11, %p2563_p2  ;;  %s2214_s10 = sshll.u32 %s2347_s14, 4  ;;  %s2215_s10 = int_to_ptr.vmem [resolvable:$false] %s2214_s10 }
 0x56d   : > { %s2216_s23 = scalar_lea.vmem %s2215_s10, 256  ;;  %p2217_p10 = scmp.lt.s32.totalorder %s1641_s7, %s2215_s10 }
 0x56e   : > { %s2978_s19 = smov %s2977_s22  ;;  %s1638_s9 = scalar_lea.hbm %s2977_s22, %s1887_s4 }
 0x56f   : > { %p2213_p0 = pneg %p2212_p4  ;;  %p2218_p7 = scmp.lt.s32.totalorder %s2216_s23, %s2210_s8 }
 0x571   : > { %p2219_p8 = por %p2218_p7, %p2217_p10 }
 0x573   : > { %p2220_p1 = pnand %p2219_p8, %p2213_p0 }
 0x575   : > { %2223 = shalt.err (!%p2220_p1)
}
 0x576   : > { %s2224_s2 = scalar_lea.hbm %s1638_s9, 128  ;;  %s2228_s21 = scalar_lea.hbm %s2978_s19, 512 }
 0x577   : > { %p2225_p3 = scmp.ne.s32.totalorder %s1638_s9, %s2224_s2  ;;  %p2229_p12 = scmp.lt.s32.totalorder %s1638_s9, %s2978_s19 }
 0x578   : > { %p2230_p5 = scmp.lt.s32.totalorder %s2228_s21, %s2224_s2 }
 0x579   : > { %p2226_p9 = pnand %p2225_p3, %p2563_p2 }
 0x57a   : > { %p2231_p13 = por %p2230_p5, %p2229_p12 }
 0x57b   : > { %p2227_p6 = pneg %p2226_p9 }
 0x57d   : > { %p2232_p11 = pnand %p2231_p13, %p2227_p6 }
 0x57f   : > { %2235 = shalt.err (!%p2232_p11)
}
 0x580   : > { %2013 = dma.vmem_to_hbm [thread:$0]  (%p2563_p2), %s1641_s7, 128, %s1638_s9, %s1612_s6  }
 0x581 PF: > { %s2980_s8 = sld [smem:[#allocation16_spill]]  ;;  %p2031_p4 = scmp.ge.s32.totalorder %s2338_s3, 2 }
 0x582   : > { %p2981_p0 = scmp.ne.s32.totalorder %s2950_s13, 0 }
 0x584   : > { %p2024_p10 = pnand %p2031_p4, %p2981_p0 }
 0x586   : > { %p2025_p7 = pneg %p2024_p10 }
 0x587   : > { %s1652_s10 = sand.u32 1, %s2980_s8  }
 0x588   : > { %s1653_s25 = scalar_lea.sflag [#allocation5], %s1652_s10 }
 0x589   : > { %2289 = dma.done.wait (%p2025_p7), %s1653_s25, 128  }
 0x58a   : > { %2291 = vsyncadd (%p2025_p7), %s1653_s25, 4294967168  ;;  %s1661_s27 = sand.u32 1, %s2298_s0   ;;  %p2982_p8 = scmp.ne.s32.totalorder %s2954_s28, 0 }
 0x58b   : > { %s1662_s29 = scalar_lea.sflag [#allocation10], %s1661_s27 }
 0x58c   : > { %p2027_p1 = pnand %p2031_p4, %p2982_p8 }
 0x58e   : > { %p2028_p3 = pneg %p2027_p1 }
 0x590   : > { %2293 = dma.done.wait (%p2028_p3), %s1662_s29, 128  }
 0x591   : > { %2295 = vsyncadd (%p2028_p3), %s1662_s29, 4294967168  ;;  %s42_s3 = sadd.s32 1, %s2338_s3   ;;  %s2983_s6 = sld [smem:[#allocation15_spill]] }
 0x592   : > { %p39_p2 = scmp.ge.s32.totalorder %s42_s3, 6   ;;  %s2984_s20 = sld [smem:[#allocation24_spill]] }
 0x593   : > { %s2985_s13 = sld [smem:[#allocation17_spill]]  ;;  %s2991_s0 = smov %s2302_s30 }
 0x594   : > { %s2986_s22 = sld [smem:[#allocation23_spill]]  ;;  %s2993_s21 = smov %s2314_s1 }
 0x595   : > { %s2987_s2 = sld [smem:[#allocation18_spill]]  ;;  %41 = sbr.rel (!%p39_p2) target bundleno = 32 (0x20), region = 198 }
 0x596   : > { %s2988_s23 = sld [smem:[#allocation19_spill]] }
 0x597   : > { %s2989_s24 = sld [smem:[#allocation20_spill]]  ;;  %s2992_s30 = smov %s2983_s6 }
 0x598   : > { %s2990_s25 = sld [smem:[#allocation21_spill]] }
 0x599   : > { %s2994_s1 = smov %s2985_s13 }
 0x59a   :  { %1667 = vsyncpa [#allocation4], 1 }
 0x59b   :  { %1669 = vsyncpa [#allocation4 + $0x1], 1 }
 0x59c   :  { %1670 = vsyncpa [#allocation7], 1 }
 0x59d   :  { %1672 = vsyncpa [#allocation7 + $0x1], 1 }
 0x59e   :  { %1673 = vsyncpa [#allocation5], 1 }
 0x59f   :  { %1675 = vsyncpa [#allocation5 + $0x1], 1 }
 0x5a0   :  { %1676 = vsyncpa [#allocation10], 1 }
 0x5a1   :  { %1678 = vsyncpa [#allocation10 + $0x1], 1 }

</bundles_post_ra>
